<compile_context>
chip_gen: v7x
topology: tpu7x:2x2x1
jax: 0.10.0
libtpu: 0.0.40
codegen_flags: <defaults>
</compile_context>

<pallas_src>
from functools import partial

import numpy as np
import jax
import jax.numpy as jnp
from jax import lax
from jax.experimental import pallas as pl
from jax.experimental.pallas import tpu as pltpu

EPS = 1e-5
NEG_INF = -1e30
_MIB = 1024 * 1024


# --------------------------- small utilities ---------------------------

def _const_spec(shape):
    """Constant-index block (fetched once); single-buffered when supported."""
    idx = lambda *_: (0,) * len(shape)
    try:
        return pl.BlockSpec(shape, idx, pipeline_mode=pl.Buffered(1))
    except TypeError:  # older jax without pipeline_mode kwarg
        return pl.BlockSpec(shape, idx)


def _vmem_limit(est_bytes):
    """Explicit scoped-VMEM limit: 2x estimate + headroom, clamped."""
    return int(min(max(2 * est_bytes + 8 * _MIB, 24 * _MIB), 100 * _MIB))


def _row_tile(n):
    """(tile, padded_n) for row-tiling a [n, E] slab; tile is a mult of 8."""
    for t in (512, 256, 128, 64, 32, 16, 8):
        if n % t == 0:
            return t, n
    tm = 256 if n > 256 else ((n + 7) // 8) * 8
    return tm, int(np.ceil(n / tm)) * tm


def _dff_tile(dff):
    if dff <= 1024:
        return dff
    for t in (1024, 512, 256, 128):
        if dff % t == 0:
            return t
    return dff


# --------------------------- in-kernel helpers ---------------------------

def _add_layernorm_f32(y, g, b):
    """LayerNorm over last dim; y f32 [R, E], g/b f32 [1, E]."""
    mu = jnp.mean(y, axis=-1, keepdims=True)
    var = jnp.mean(jnp.square(y - mu), axis=-1, keepdims=True)
    return (y - mu) * lax.rsqrt(var + EPS) * g + b


def _heads(x2d, num_heads):
    l, e = x2d.shape
    dh = e // num_heads
    return x2d.reshape(l, num_heads, dh).transpose(1, 0, 2)   # [H, L, dh]


def _mha_batched(q, k, v, mask, num_heads, approx):
    """Head-batched attention for one batch element.

    q: [Lq, E] (already scaled by 1/sqrt(dh)), k/v: [Lk, E] in compute dtype,
    mask: [Lq, Lk] additive f32.  Returns merged heads, f32 [Lq, E].
    """
    lq, e = q.shape
    qh = _heads(q, num_heads)                                  # [H, Lq, dh]
    kh = _heads(k, num_heads)
    vh = _heads(v, num_heads)
    s = jnp.einsum('hqd,hkd->hqk', qh, kh,
                   preferred_element_type=jnp.float32)         # [H, Lq, Lk]
    s = s + mask[None]
    m = jnp.max(s, axis=-1, keepdims=True)
    p = jnp.exp(s - m)
    denom = jnp.sum(p, axis=-1, keepdims=True)
    p = p * pl.reciprocal(denom, approx=approx)                # EUP slot
    ctx = jnp.einsum('hqk,hkd->hqd', p.astype(vh.dtype), vh,
                     preferred_element_type=jnp.float32)       # [H, Lq, dh]
    return ctx.transpose(1, 0, 2).reshape(lq, e)               # [Lq, E] f32


# --------------------------- Pallas kernels ---------------------------

def self_attn_kernel(x_ref, am_ref, kpm_ref, wqkv_ref, bqkv_ref, wo_ref, bo_ref,
                     g_ref, b_ref, o_ref, *, num_heads, scale, approx):
    # x: [1, L, E], am: [L, L], kpm: [1, 1, L], wqkv: [E, 3E]
    x = x_ref[0]                                               # [L, E]
    e = x.shape[-1]
    qkv = (jnp.dot(x, wqkv_ref[...], preferred_element_type=jnp.float32)
           + bqkv_ref[...])                                    # [L, 3E] f32
    # split + cast immediately (lane-aligned slices when E % 128 == 0)
    q = (qkv[:, :e] * scale).astype(x.dtype)
    k = qkv[:, e:2 * e].astype(x.dtype)
    v = qkv[:, 2 * e:].astype(x.dtype)
    mask = am_ref[...] + kpm_ref[0]                            # [L, L] f32
    attn = _mha_batched(q, k, v, mask, num_heads, approx)      # [L, E] f32
    out = (jnp.dot(attn.astype(x.dtype), wo_ref[...],
                   preferred_element_type=jnp.float32) + bo_ref[...])
    y = out + x.astype(jnp.float32)                            # residual
    o_ref[0] = _add_layernorm_f32(y, g_ref[...], b_ref[...]).astype(o_ref.dtype)


def cross_attn_kernel(x_ref, mem_ref, am_ref, kpm_ref, wq_ref, bq_ref, wkv_ref,
                      bkv_ref, wo_ref, bo_ref, g_ref, b_ref, o_ref,
                      *, num_heads, scale, approx):
    # x: [1, L, E], mem: [1, S, E], am: [L, S], kpm: [1, 1, S]
    x = x_ref[0]
    mem = mem_ref[0]
    e = x.shape[-1]
    q = ((jnp.dot(x, wq_ref[...], preferred_element_type=jnp.float32)
          + bq_ref[...]) * scale).astype(x.dtype)
    kv = (jnp.dot(mem, wkv_ref[...], preferred_element_type=jnp.float32)
          + bkv_ref[...])                                      # [S, 2E] f32
    k = kv[:, :e].astype(x.dtype)
    v = kv[:, e:].astype(x.dtype)
    mask = am_ref[...] + kpm_ref[0]                            # [L, S] f32
    attn = _mha_batched(q, k, v, mask, num_heads, approx)
    out = (jnp.dot(attn.astype(x.dtype), wo_ref[...],
                   preferred_element_type=jnp.float32) + bo_ref[...])
    y = out + x.astype(jnp.float32)
    o_ref[0] = _add_layernorm_f32(y, g_ref[...], b_ref[...]).astype(o_ref.dtype)


def ffn_ln_kernel(x_ref, w1_ref, b1_ref, w2_ref, b2_ref, g_ref, b_ref, *rest):
    # rest = (o_ref, acc_ref) or (gf_ref, bf_ref, o_ref, acc_ref)
    if len(rest) == 4:
        gf_ref, bf_ref, o_ref, acc_ref = rest
    else:
        gf_ref = bf_ref = None
        o_ref, acc_ref = rest

    k = pl.program_id(1)

    @pl.when(k == 0)
    def _():
        acc_ref[...] = jnp.zeros_like(acc_ref)

    x = x_ref[...]                                             # [tm, E]
    h = (jnp.dot(x, w1_ref[...], preferred_element_type=jnp.float32)
         + b1_ref[...])                                        # [tm, tdff]
    h = jnp.maximum(h, 0.0)                                    # ReLU
    acc_ref[...] += jnp.dot(h.astype(x.dtype), w2_ref[...],
                            preferred_element_type=jnp.float32)

    @pl.when(k == pl.num_programs(1) - 1)
    def _():
        y = acc_ref[...] + b2_ref[...] + x.astype(jnp.float32)  # residual
        y = _add_layernorm_f32(y, g_ref[...], b_ref[...])
        if gf_ref is not None:                                  # fused final norm
            y = _add_layernorm_f32(y, gf_ref[...], bf_ref[...])
        o_ref[...] = y.astype(o_ref.dtype)


# --------------------------- pallas_call wrappers ---------------------------

def self_attn_block(x, attn_mask, kpm, p, num_heads, approx):
    b, l, e = x.shape
    scale = 1.0 / float(np.sqrt(e // num_heads))
    dsz = x.dtype.itemsize
    est = (4 * l * e * dsz                      # x in + out (double-buffered)
           + l * l * 4 + 2 * l * 4              # attn mask + kpm
           + (4 * e * e + 7 * e) * dsz          # weights/biases (single-buffered)
           + 3 * l * e * 4                      # qkv f32 slab
           + 3 * l * e * dsz                    # q, k, v
           + 2 * num_heads * l * l * 4          # scores + probs f32
           + 2 * l * e * 4)                     # ctx + attn f32
    cp = pltpu.CompilerParams(dimension_semantics=("parallel",),
                              vmem_limit_bytes=_vmem_limit(est))
    return pl.pallas_call(
        partial(self_attn_kernel, num_heads=num_heads, scale=scale, approx=approx),
        out_shape=jax.ShapeDtypeStruct((b, l, e), x.dtype),
        grid=(b,),
        in_specs=[
            pl.BlockSpec((1, l, e), lambda i: (i, 0, 0)),
            _const_spec((l, l)),                               # 2-D mask, fetched once
            pl.BlockSpec((1, 1, l), lambda i: (i, 0, 0)),      # per-batch padding bias
            _const_spec((e, 3 * e)),
            _const_spec((1, 3 * e)),
            _const_spec((e, e)),
            _const_spec((1, e)),
            _const_spec((1, e)),
            _const_spec((1, e)),
        ],
        out_specs=pl.BlockSpec((1, l, e), lambda i: (i, 0, 0)),
        compiler_params=cp,
    )(x, attn_mask, kpm, p['wqkv'], p['bqkv'], p['wo'], p['bo'], p['g'], p['b'])


def cross_attn_block(x, mem, attn_mask, kpm, p, num_heads, approx):
    b, l, e = x.shape
    s = mem.shape[1]
    scale = 1.0 / float(np.sqrt(e // num_heads))
    dsz = x.dtype.itemsize
    est = (4 * l * e * dsz + 2 * s * e * dsz
           + l * s * 4 + 2 * s * 4
           + (3 * e * e + 6 * e) * dsz
           + l * e * 4 + 2 * s * e * 4
           + (l + 2 * s) * e * dsz
           + 2 * num_heads * l * s * 4
           + 2 * l * e * 4)
    cp = pltpu.CompilerParams(dimension_semantics=("parallel",),
                              vmem_limit_bytes=_vmem_limit(est))
    return pl.pallas_call(
        partial(cross_attn_kernel, num_heads=num_heads, scale=scale, approx=approx),
        out_shape=jax.ShapeDtypeStruct((b, l, e), x.dtype),
        grid=(b,),
        in_specs=[
            pl.BlockSpec((1, l, e), lambda i: (i, 0, 0)),
            pl.BlockSpec((1, s, e), lambda i: (i, 0, 0)),
            _const_spec((l, s)),
            pl.BlockSpec((1, 1, s), lambda i: (i, 0, 0)),
            _const_spec((e, e)),
            _const_spec((1, e)),
            _const_spec((e, 2 * e)),
            _const_spec((1, 2 * e)),
            _const_spec((e, e)),
            _const_spec((1, e)),
            _const_spec((1, e)),
            _const_spec((1, e)),
        ],
        out_specs=pl.BlockSpec((1, l, e), lambda i: (i, 0, 0)),
        compiler_params=cp,
    )(x, mem, attn_mask, kpm, p['wq'], p['bq'], p['wkv'], p['bkv'],
      p['wo'], p['bo'], p['g'], p['b'])


def ffn_block(x2d, p, final_norm_params=None):
    n, e = x2d.shape
    dff = p['w1'].shape[1]
    tm, n_pad = _row_tile(n)
    if n_pad != n:
        x2d = jnp.pad(x2d, ((0, n_pad - n), (0, 0)))
    tdff = _dff_tile(dff)
    dsz = x2d.dtype.itemsize
    est = (4 * tm * e * dsz                        # x + out (double-buffered)
           + 2 * (e * tdff + tdff * e) * dsz       # w1/w2 tiles (double-buffered)
           + 2 * tm * tdff * 4                     # hidden f32
           + tm * e * 4                            # acc scratch
           + (2 * tdff + 6 * e) * 4)
    cp = pltpu.CompilerParams(dimension_semantics=("parallel", "arbitrary"),
                              vmem_limit_bytes=_vmem_limit(est))
    in_specs = [
        pl.BlockSpec((tm, e), lambda i, k: (i, 0)),
        pl.BlockSpec((e, tdff), lambda i, k: (0, k)),
        pl.BlockSpec((1, tdff), lambda i, k: (0, k)),
        pl.BlockSpec((tdff, e), lambda i, k: (k, 0)),
        _const_spec((1, e)),
        _const_spec((1, e)),
        _const_spec((1, e)),
    ]
    args = [x2d, p['w1'], p['b1'], p['w2'], p['b2'], p['g'], p['b']]
    if final_norm_params is not None:
        in_specs += [_const_spec((1, e)), _const_spec((1, e))]
        args += [final_norm_params['g'], final_norm_params['b']]

    out = pl.pallas_call(
        ffn_ln_kernel,
        out_shape=jax.ShapeDtypeStruct((n_pad, e), x2d.dtype),
        grid=(n_pad // tm, dff // tdff),
        in_specs=in_specs,
        out_specs=pl.BlockSpec((tm, e), lambda i, k: (i, 0)),
        scratch_shapes=[pltpu.VMEM((tm, e), jnp.float32)],
        compiler_params=cp,
    )(*args)
    return out[:n] if n_pad != n else out


# --------------------------- mask / param glue ---------------------------

def _attn_bias_2d(lq, lk, attn_mask):
    """Shared-across-batch additive attention mask [Lq, Lk] (f32)."""
    if attn_mask is None:
        return jnp.zeros((lq, lk), jnp.float32)
    return attn_mask.astype(jnp.float32)


def _key_padding_bias(b, lk, key_padding_mask):
    """Per-batch additive key-padding bias [B, 1, Lk] (f32)."""
    if key_padding_mask is None:
        return jnp.zeros((b, 1, lk), jnp.float32)
    return jnp.where(key_padding_mask, NEG_INF, 0.0).astype(jnp.float32)[:, None, :]


def fuse_params(params, compute_dtype):
    """Concatenate QKV / KV weights, reshape biases/LN params for the kernels."""
    def cw(w):   # matmul weights go to the compute dtype
        return jnp.asarray(w, compute_dtype)

    def row(v):  # small vectors stay f32, lane-dense [1, D]
        return jnp.asarray(v, jnp.float32).reshape(1, -1)

    layers = []
    for lp in params['layers']:
        sa, ca = lp['self_attn'], lp['cross_attn']
        layers.append({
            'self': {
                'wqkv': cw(jnp.concatenate([sa['wq'], sa['wk'], sa['wv']], axis=1)),
                'bqkv': row(jnp.concatenate([sa['bq'], sa['bk'], sa['bv']])),
                'wo': cw(sa['wo']), 'bo': row(sa['bo']),
                'g': row(lp['norm1']['g']), 'b': row(lp['norm1']['b']),
            },
            'cross': {
                'wq': cw(ca['wq']), 'bq': row(ca['bq']),
                'wkv': cw(jnp.concatenate([ca['wk'], ca['wv']], axis=1)),
                'bkv': row(jnp.concatenate([ca['bk'], ca['bv']])),
                'wo': cw(ca['wo']), 'bo': row(ca['bo']),
                'g': row(lp['norm2']['g']), 'b': row(lp['norm2']['b']),
            },
            'ffn': {
                'w1': cw(lp['ffn']['w1']), 'b1': row(lp['ffn']['b1']),
                'w2': cw(lp['ffn']['w2']), 'b2': row(lp['ffn']['b2']),
                'g': row(lp['norm3']['g']), 'b': row(lp['norm3']['b']),
            },
        })
    norm = None
    if params.get('norm') is not None:
        norm = {'g': row(params['norm']['g']), 'b': row(params['norm']['b'])}
    return {'layers': layers, 'norm': norm}


def transformer_decoder(tgt, memory, params, num_heads, tgt_mask=None,
                        memory_mask=None, tgt_key_padding_mask=None,
                        memory_key_padding_mask=None,
                        compute_dtype=jnp.bfloat16, approx_recip=True):
    fused = fuse_params(params, compute_dtype)

    # one layout change in, one out: internally batch-first [B, L, E]
    x = jnp.transpose(tgt, (1, 0, 2)).astype(compute_dtype)
    mem = jnp.transpose(memory, (1, 0, 2)).astype(compute_dtype)
    b, l, e = x.shape
    s = mem.shape[1]
    assert e % num_heads == 0, "embed_dim must be divisible by num_heads"

    sa_mask = _attn_bias_2d(l, l, tgt_mask)
    ca_mask = _attn_bias_2d(l, s, memory_mask)
    sa_kpm = _key_padding_bias(b, l, tgt_key_padding_mask)
    ca_kpm = _key_padding_bias(b, s, memory_key_padding_mask)

    n_layers = len(fused['layers'])
    for li, lp in enumerate(fused['layers']):
        x = self_attn_block(x, sa_mask, sa_kpm, lp['self'], num_heads, approx_recip)
        x = cross_attn_block(x, mem, ca_mask, ca_kpm, lp['cross'], num_heads,
                             approx_recip)
        final_p = fused['norm'] if li == n_layers - 1 else None
        x = ffn_block(x.reshape(b * l, e), lp['ffn'], final_p).reshape(b, l, e)

    return jnp.transpose(x, (1, 0, 2))   # back to [L, B, E]


# --------------------------- parameter init ---------------------------

def init_params(key, num_layers, e, dff, with_norm=True):
    def w(k, shape):
        return jax.random.normal(k, shape, jnp.float32) * 0.05

    def attn_params(k):
        ks = jax.random.split(k, 8)
        return {'wq': w(ks[0], (e, e)), 'wk': w(ks[1], (e, e)),
                'wv': w(ks[2], (e, e)), 'wo': w(ks[3], (e, e)),
                'bq': w(ks[4], (e,)), 'bk': w(ks[5], (e,)),
                'bv': w(ks[6], (e,)), 'bo': w(ks[7], (e,))}

    layers = []
    for i in range(num_layers):
        ks = jax.random.split(jax.random.fold_in(key, i), 6)
        layers.append({
            'self_attn': attn_params(ks[0]),
            'cross_attn': attn_params(ks[1]),
            'ffn': {'w1': w(ks[2], (e, dff)), 'b1': w(ks[3], (dff,)),
                    'w2': w(ks[4], (dff, e)), 'b2': w(ks[5], (e,))},
            'norm1': {'g': jnp.ones((e,), jnp.float32), 'b': jnp.zeros((e,), jnp.float32)},
            'norm2': {'g': jnp.ones((e,), jnp.float32), 'b': jnp.zeros((e,), jnp.float32)},
            'norm3': {'g': jnp.ones((e,), jnp.float32), 'b': jnp.zeros((e,), jnp.float32)},
        })
    norm = ({'g': jnp.ones((e,), jnp.float32), 'b': jnp.zeros((e,), jnp.float32)}
            if with_norm else None)
    return {'layers': layers, 'norm': norm}


# --------------------------- pure-JAX reference ---------------------------

def _ref_ln(y, g, b):
    mu = y.mean(-1, keepdims=True)
    var = ((y - mu) ** 2).mean(-1, keepdims=True)
    return (y - mu) * lax.rsqrt(var + EPS) * g + b


def _ref_mha(q_in, kv_in, p, h, mask):
    bsz, lq, e = q_in.shape
    dh = e // h
    q = q_in @ p['wq'] + p['bq']
    k = kv_in @ p['wk'] + p['bk']
    v = kv_in @ p['wv'] + p['bv']
    qh = q.reshape(bsz, lq, h, dh).transpose(0, 2, 1, 3)
    kh = k.reshape(bsz, -1, h, dh).transpose(0, 2, 1, 3)
    vh = v.reshape(bsz, -1, h, dh).transpose(0, 2, 1, 3)
    s = jnp.einsum('bhqd,bhkd->bhqk', qh, kh) / np.sqrt(dh) + mask[:, None]
    a = jax.nn.softmax(s, axis=-1)
    o = jnp.einsum('bhqk,bhkd->bhqd', a, vh)
    o = o.transpose(0, 2, 1, 3).reshape(bsz, lq, e)
    return o @ p['wo'] + p['bo']


def ref_decoder(tgt, memory, params, h, tgt_mask=None, memory_mask=None,
                tgt_key_padding_mask=None, memory_key_padding_mask=None):
    x = jnp.transpose(tgt, (1, 0, 2))
    mem = jnp.transpose(memory, (1, 0, 2))
    b, l, e = x.shape
    s = mem.shape[1]
    sm = _attn_bias_2d(l, l, tgt_mask)[None] + _key_padding_bias(b, l, tgt_key_padding_mask)
    cm = _attn_bias_2d(l, s, memory_mask)[None] + _key_padding_bias(b, s, memory_key_padding_mask)
    for lp in params['layers']:
        sa = _ref_mha(x, x, lp['self_attn'], h, sm)
        x = _ref_ln(x + sa, lp['norm1']['g'], lp['norm1']['b'])
        ca = _ref_mha(x, mem, lp['cross_attn'], h, cm)
        x = _ref_ln(x + ca, lp['norm2']['g'], lp['norm2']['b'])
        hid = jnp.maximum(x @ lp['ffn']['w1'] + lp['ffn']['b1'], 0.0)
        f = hid @ lp['ffn']['w2'] + lp['ffn']['b2']
        x = _ref_ln(x + f, lp['norm3']['g'], lp['norm3']['b'])
    if params.get('norm') is not None:
        x = _ref_ln(x, params['norm']['g'], params['norm']['b'])
    return jnp.transpose(x, (1, 0, 2))


# --------------------------- demo ---------------------------

if __name__ == "__main__":
    L, S, B, E, H, DFF, NL = 16, 24, 2, 128, 4, 256, 2
    key = jax.random.PRNGKey(0)
    k_tgt, k_mem, k_par = jax.random.split(key, 3)

    tgt = jax.random.normal(k_tgt, (L, B, E), jnp.float32)
    memory = jax.random.normal(k_mem, (S, B, E), jnp.float32)
    params = init_params(k_par, NL, E, DFF, with_norm=True)

    # causal mask on the target sequence (additive, -inf above the diagonal)
    tgt_mask = jnp.where(jnp.triu(jnp.ones((L, L), bool), k=1),
                         NEG_INF, 0.0).astype(jnp.float32)
    # pad the last two memory positions of batch element 1
    mem_kpm = jnp.zeros((B, S), bool).at[1, S - 2:].set(True)

    ref = ref_decoder(tgt, memory, params, H, tgt_mask=tgt_mask,
                      memory_key_padding_mask=mem_kpm)

    # f32 path with exact reciprocal -- tight check against the reference
    out_f32 = transformer_decoder(tgt, memory, params, H, tgt_mask=tgt_mask,
                                  memory_key_padding_mask=mem_kpm,
                                  compute_dtype=jnp.float32, approx_recip=False)
    out_f32 = jax.block_until_ready(out_f32)
    assert out_f32.shape == (L, B, E)
    assert np.allclose(np.asarray(out_f32), np.asarray(ref), atol=1e-3, rtol=1e-3), \
        "Pallas f32 output mismatch vs reference"

    # default path: bf16 MXU compute + EUP approx reciprocal (looser check)
    out_bf16 = transformer_decoder(tgt, memory, params, H, tgt_mask=tgt_mask,
                                   memory_key_padding_mask=mem_kpm)
    out_bf16 = jax.block_until_ready(out_bf16)
    assert np.allclose(np.asarray(jnp.asarray(out_bf16, jnp.float32)),
                       np.asarray(ref), atol=0.25, rtol=0.25), \
        "Pallas bf16 output mismatch vs reference"

    print("KERNEL_OK")
</pallas_src>

<mosaic_0001>
module attributes {stable_mosaic.version = 11 : i64} {
  func.func @self_attn_kernel(%arg0: i32, %arg1: memref<1x16x128xf32, #tpu.memory_space<vmem>>, %arg2: memref<16x16xf32, #tpu.memory_space<vmem>>, %arg3: memref<1x1x16xf32, #tpu.memory_space<vmem>>, %arg4: memref<128x384xf32, #tpu.memory_space<vmem>>, %arg5: memref<1x384xf32, #tpu.memory_space<vmem>>, %arg6: memref<128x128xf32, #tpu.memory_space<vmem>>, %arg7: memref<1x128xf32, #tpu.memory_space<vmem>>, %arg8: memref<1x128xf32, #tpu.memory_space<vmem>>, %arg9: memref<1x128xf32, #tpu.memory_space<vmem>>, %arg10: memref<1x16x128xf32, #tpu.memory_space<vmem>>) attributes {dimension_semantics = [#tpu.dimension_semantics<parallel>], iteration_bounds = array<i64: 2>, scalar_prefetch = 0 : i64, scratch_operands = 0 : i64, tpu.core_type = #tpu.core_type<tc>, window_params = [{transform_indices = @transform_0, window_bounds = array<i64: 1, 16, 128>}, {pipeline_mode = #tpu.pipeline_mode<synchronous>, transform_indices = @transform_1, window_bounds = array<i64: 16, 16>}, {transform_indices = @transform_2, window_bounds = array<i64: 1, 1, 16>}, {pipeline_mode = #tpu.pipeline_mode<synchronous>, transform_indices = @transform_3, window_bounds = array<i64: 128, 384>}, {pipeline_mode = #tpu.pipeline_mode<synchronous>, transform_indices = @transform_4, window_bounds = array<i64: 1, 384>}, {pipeline_mode = #tpu.pipeline_mode<synchronous>, transform_indices = @transform_5, window_bounds = array<i64: 128, 128>}, {pipeline_mode = #tpu.pipeline_mode<synchronous>, transform_indices = @transform_6, window_bounds = array<i64: 1, 128>}, {pipeline_mode = #tpu.pipeline_mode<synchronous>, transform_indices = @transform_7, window_bounds = array<i64: 1, 128>}, {pipeline_mode = #tpu.pipeline_mode<synchronous>, transform_indices = @transform_8, window_bounds = array<i64: 1, 128>}, {transform_indices = @transform_9, window_bounds = array<i64: 1, 16, 128>}]} {
    %c0 = arith.constant 0 : index
    %c0_0 = arith.constant 0 : index
    %c0_1 = arith.constant 0 : index
    %0 = vector.load %arg1[%c0, %c0_0, %c0_1] : memref<1x16x128xf32, #tpu.memory_space<vmem>>, vector<1x16x128xf32>
    %1 = vector.shape_cast %0 : vector<1x16x128xf32> to vector<16x128xf32>
    %c0_2 = arith.constant 0 : index
    %c0_3 = arith.constant 0 : index
    %2 = vector.load %arg4[%c0_2, %c0_3] : memref<128x384xf32, #tpu.memory_space<vmem>>, vector<128x384xf32>
    %cst = arith.constant dense<0.000000e+00> : vector<16x384xf32>
    %3 = tpu.matmul %1, %2, %cst {dimension_numbers = #tpu.dot_dimension_numbers<[1], [0], [0], [1], [0, 0, 1, 1], [], []>} : vector<16x128xf32>, vector<128x384xf32>, vector<16x384xf32> -> vector<16x384xf32>
    %c0_4 = arith.constant 0 : index
    %c0_5 = arith.constant 0 : index
    %4 = vector.load %arg5[%c0_4, %c0_5] : memref<1x384xf32, #tpu.memory_space<vmem>>, vector<1x384xf32>
    %5 = vector.broadcast %4 : vector<1x384xf32> to vector<16x384xf32>
    %6 = arith.addf %3, %5 : vector<16x384xf32>
    %7 = vector.extract_strided_slice %6 {offsets = [0, 0], sizes = [16, 128], strides = [1, 1]} : vector<16x384xf32> to vector<16x128xf32>
    %cst_6 = arith.constant 0.176776692 : f32
    %8 = vector.broadcast %cst_6 : f32 to vector<16x128xf32>
    %9 = arith.mulf %7, %8 : vector<16x128xf32>
    %10 = vector.extract_strided_slice %6 {offsets = [0, 128], sizes = [16, 128], strides = [1, 1]} : vector<16x384xf32> to vector<16x128xf32>
    %11 = vector.extract_strided_slice %6 {offsets = [0, 256], sizes = [16, 128], strides = [1, 1]} : vector<16x384xf32> to vector<16x128xf32>
    %c0_7 = arith.constant 0 : index
    %c0_8 = arith.constant 0 : index
    %12 = vector.load %arg2[%c0_7, %c0_8] : memref<16x16xf32, #tpu.memory_space<vmem>>, vector<16x16xf32>
    %c0_9 = arith.constant 0 : index
    %c0_10 = arith.constant 0 : index
    %c0_11 = arith.constant 0 : index
    %13 = vector.load %arg3[%c0_9, %c0_10, %c0_11] : memref<1x1x16xf32, #tpu.memory_space<vmem>>, vector<1x1x16xf32>
    %14 = vector.shape_cast %13 : vector<1x1x16xf32> to vector<1x16xf32>
    %15 = vector.broadcast %14 : vector<1x16xf32> to vector<16x16xf32>
    %16 = arith.addf %12, %15 : vector<16x16xf32>
    %17 = vector.shape_cast %9 : vector<16x128xf32> to vector<16x4x32xf32>
    %18 = tpu.transpose %17, [1, 0, 2] : vector<16x4x32xf32> -> vector<4x16x32xf32>
    %19 = vector.shape_cast %10 : vector<16x128xf32> to vector<16x4x32xf32>
    %20 = tpu.transpose %19, [1, 0, 2] : vector<16x4x32xf32> -> vector<4x16x32xf32>
    %21 = vector.shape_cast %11 : vector<16x128xf32> to vector<16x4x32xf32>
    %22 = tpu.transpose %21, [1, 0, 2] : vector<16x4x32xf32> -> vector<4x16x32xf32>
    "tpu.trace_start"() <{level = 10 : i32, message = "hqd,hkd->hqk"}> : () -> ()
    %cst_12 = arith.constant dense<0.000000e+00> : vector<4x16x16xf32>
    %23 = tpu.matmul %18, %20, %cst_12 {dimension_numbers = #tpu.dot_dimension_numbers<[2], [2], [1], [1], [0, 0, 0, 1, 1, 1], [0], [0]>} : vector<4x16x32xf32>, vector<4x16x32xf32>, vector<4x16x16xf32> -> vector<4x16x16xf32>
    "tpu.trace_stop"() : () -> ()
    %24 = vector.shape_cast %16 : vector<16x16xf32> to vector<1x16x16xf32>
    %25 = vector.broadcast %24 : vector<1x16x16xf32> to vector<4x16x16xf32>
    %26 = arith.addf %23, %25 : vector<4x16x16xf32>
    %cst_13 = arith.constant dense<0xFF800000> : vector<4x16xf32>
    %27 = vector.multi_reduction <maximumf>, %26, %cst_13 [2] : vector<4x16x16xf32> to vector<4x16xf32>
    %28 = vector.shape_cast %27 : vector<4x16xf32> to vector<4x16x1xf32>
    %29 = vector.broadcast %28 : vector<4x16x1xf32> to vector<4x16x16xf32>
    %30 = arith.subf %26, %29 : vector<4x16x16xf32>
    %31 = math.exp %30 : vector<4x16x16xf32>
    %cst_14 = arith.constant dense<0.000000e+00> : vector<4x16xf32>
    %32 = vector.multi_reduction <add>, %31, %cst_14 [2] : vector<4x16x16xf32> to vector<4x16xf32>
    %33 = vector.shape_cast %32 : vector<4x16xf32> to vector<4x16x1xf32>
    %34 = tpu.reciprocal %33 : vector<4x16x1xf32> -> vector<4x16x1xf32>
    %35 = vector.broadcast %34 : vector<4x16x1xf32> to vector<4x16x16xf32>
    %36 = arith.mulf %31, %35 : vector<4x16x16xf32>
    "tpu.trace_start"() <{level = 10 : i32, message = "hqk,hkd->hqd"}> : () -> ()
    %cst_15 = arith.constant dense<0.000000e+00> : vector<4x16x32xf32>
    %37 = tpu.matmul %36, %22, %cst_15 {dimension_numbers = #tpu.dot_dimension_numbers<[2], [1], [1], [2], [0, 0, 0, 1, 1, 2], [0], [0]>} : vector<4x16x16xf32>, vector<4x16x32xf32>, vector<4x16x32xf32> -> vector<4x16x32xf32>
    "tpu.trace_stop"() : () -> ()
    %38 = tpu.transpose %37, [1, 0, 2] : vector<4x16x32xf32> -> vector<16x4x32xf32>
    %39 = vector.shape_cast %38 : vector<16x4x32xf32> to vector<16x128xf32>
    %c0_16 = arith.constant 0 : index
    %c0_17 = arith.constant 0 : index
    %40 = vector.load %arg6[%c0_16, %c0_17] : memref<128x128xf32, #tpu.memory_space<vmem>>, vector<128x128xf32>
    %cst_18 = arith.constant dense<0.000000e+00> : vector<16x128xf32>
    %41 = tpu.matmul %39, %40, %cst_18 {dimension_numbers = #tpu.dot_dimension_numbers<[1], [0], [0], [1], [0, 0, 1, 1], [], []>} : vector<16x128xf32>, vector<128x128xf32>, vector<16x128xf32> -> vector<16x128xf32>
    %c0_19 = arith.constant 0 : index
    %c0_20 = arith.constant 0 : index
    %42 = vector.load %arg7[%c0_19, %c0_20] : memref<1x128xf32, #tpu.memory_space<vmem>>, vector<1x128xf32>
    %43 = vector.broadcast %42 : vector<1x128xf32> to vector<16x128xf32>
    %44 = arith.addf %41, %43 : vector<16x128xf32>
    %45 = arith.addf %44, %1 : vector<16x128xf32>
    %c0_21 = arith.constant 0 : index
    %c0_22 = arith.constant 0 : index
    %46 = vector.load %arg8[%c0_21, %c0_22] : memref<1x128xf32, #tpu.memory_space<vmem>>, vector<1x128xf32>
    %c0_23 = arith.constant 0 : index
    %c0_24 = arith.constant 0 : index
    %47 = vector.load %arg9[%c0_23, %c0_24] : memref<1x128xf32, #tpu.memory_space<vmem>>, vector<1x128xf32>
    %cst_25 = arith.constant dense<0.000000e+00> : vector<16xf32>
    %48 = vector.multi_reduction <add>, %45, %cst_25 [1] : vector<16x128xf32> to vector<16xf32>
    %49 = vector.shape_cast %48 : vector<16xf32> to vector<16x1xf32>
    %cst_26 = arith.constant 1.280000e+02 : f32
    %50 = vector.broadcast %cst_26 : f32 to vector<16x1xf32>
    %51 = arith.divf %49, %50 : vector<16x1xf32>
    %52 = vector.broadcast %51 : vector<16x1xf32> to vector<16x128xf32>
    %53 = arith.subf %45, %52 : vector<16x128xf32>
    %54 = arith.mulf %53, %53 : vector<16x128xf32>
    %cst_27 = arith.constant dense<0.000000e+00> : vector<16xf32>
    %55 = vector.multi_reduction <add>, %54, %cst_27 [1] : vector<16x128xf32> to vector<16xf32>
    %56 = vector.shape_cast %55 : vector<16xf32> to vector<16x1xf32>
    %cst_28 = arith.constant 1.280000e+02 : f32
    %57 = vector.broadcast %cst_28 : f32 to vector<16x1xf32>
    %58 = arith.divf %56, %57 : vector<16x1xf32>
    %59 = vector.broadcast %51 : vector<16x1xf32> to vector<16x128xf32>
    %60 = arith.subf %45, %59 : vector<16x128xf32>
    %cst_29 = arith.constant 9.99999974E-6 : f32
    %61 = vector.broadcast %cst_29 : f32 to vector<16x1xf32>
    %62 = arith.addf %58, %61 : vector<16x1xf32>
    %63 = math.rsqrt %62 : vector<16x1xf32>
    %64 = vector.broadcast %63 : vector<16x1xf32> to vector<16x128xf32>
    %65 = arith.mulf %60, %64 : vector<16x128xf32>
    %66 = vector.broadcast %46 : vector<1x128xf32> to vector<16x128xf32>
    %67 = arith.mulf %65, %66 : vector<16x128xf32>
    %68 = vector.broadcast %47 : vector<1x128xf32> to vector<16x128xf32>
    %69 = arith.addf %67, %68 : vector<16x128xf32>
    %c0_30 = arith.constant 0 : index
    %c0_31 = arith.constant 0 : index
    %c0_32 = arith.constant 0 : index
    %70 = vector.load %arg10[%c0_30, %c0_31, %c0_32] : memref<1x16x128xf32, #tpu.memory_space<vmem>>, vector<1x16x128xf32>
    %71 = vector.shape_cast %70 : vector<1x16x128xf32> to vector<16x128xf32>
    %72 = vector.shape_cast %69 : vector<16x128xf32> to vector<1x16x128xf32>
    tpu.vector_store %arg10[%c0_30, %c0_31, %c0_32], %72 {strides = array<i32>} : memref<1x16x128xf32, #tpu.memory_space<vmem>>, vector<1x16x128xf32>,
    return
  }
  func.func @transform_0(%arg0: i32) -> (i32, i32, i32) {
    %c0_i32 = arith.constant 0 : i32
    %c0_i32_0 = arith.constant 0 : i32
    %c0_i32_1 = arith.constant 0 : i32
    return %arg0, %c0_i32, %c0_i32_0 : i32, i32, i32
  }
  func.func @transform_1(%arg0: i32) -> (i32, i32) {
    %c0_i32 = arith.constant 0 : i32
    %c0_i32_0 = arith.constant 0 : i32
    %c0_i32_1 = arith.constant 0 : i32
    return %c0_i32, %c0_i32_0 : i32, i32
  }
  func.func @transform_2(%arg0: i32) -> (i32, i32, i32) {
    %c0_i32 = arith.constant 0 : i32
    %c0_i32_0 = arith.constant 0 : i32
    %c0_i32_1 = arith.constant 0 : i32
    return %arg0, %c0_i32, %c0_i32_0 : i32, i32, i32
  }
  func.func @transform_3(%arg0: i32) -> (i32, i32) {
    %c0_i32 = arith.constant 0 : i32
    %c0_i32_0 = arith.constant 0 : i32
    %c0_i32_1 = arith.constant 0 : i32
    return %c0_i32, %c0_i32_0 : i32, i32
  }
  func.func @transform_4(%arg0: i32) -> (i32, i32) {
    %c0_i32 = arith.constant 0 : i32
    %c0_i32_0 = arith.constant 0 : i32
    %c0_i32_1 = arith.constant 0 : i32
    return %c0_i32, %c0_i32_0 : i32, i32
  }
  func.func @transform_5(%arg0: i32) -> (i32, i32) {
    %c0_i32 = arith.constant 0 : i32
    %c0_i32_0 = arith.constant 0 : i32
    %c0_i32_1 = arith.constant 0 : i32
    return %c0_i32, %c0_i32_0 : i32, i32
  }
  func.func @transform_6(%arg0: i32) -> (i32, i32) {
    %c0_i32 = arith.constant 0 : i32
    %c0_i32_0 = arith.constant 0 : i32
    %c0_i32_1 = arith.constant 0 : i32
    return %c0_i32, %c0_i32_0 : i32, i32
  }
  func.func @transform_7(%arg0: i32) -> (i32, i32) {
    %c0_i32 = arith.constant 0 : i32
    %c0_i32_0 = arith.constant 0 : i32
    %c0_i32_1 = arith.constant 0 : i32
    return %c0_i32, %c0_i32_0 : i32, i32
  }
  func.func @transform_8(%arg0: i32) -> (i32, i32) {
    %c0_i32 = arith.constant 0 : i32
    %c0_i32_0 = arith.constant 0 : i32
    %c0_i32_1 = arith.constant 0 : i32
    return %c0_i32, %c0_i32_0 : i32, i32
  }
  func.func @transform_9(%arg0: i32) -> (i32, i32, i32) {
    %c0_i32 = arith.constant 0 : i32
    %c0_i32_0 = arith.constant 0 : i32
    %c0_i32_1 = arith.constant 0 : i32
    return %arg0, %c0_i32, %c0_i32_0 : i32, i32, i32
  }
}

</mosaic_0001>

<bundles_post_ra>
// kernel: tpu_custom_call.1
= control target key start
LH: loop header
LB: loop body
LE: loop exit
PB: predicated region body
PF: predicated region fallthrough
CT: control target
= control target key end

     0   :  { %s4276_s0 = inlined_call_operand.hbm [shape: f32[2,16,128], index: 0, kind: input, shape index: {}]   ;;  %s4277_s1 = inlined_call_operand.hbm [shape: f32[16,16], index: 1, kind: input, shape index: {}]   ;;  %s4278_s2 = inlined_call_operand.vmem [shape: f32[2,1,16], index: 2, kind: input, shape index: {}]   ;;  %s4279_s3 = inlined_call_operand.hbm [shape: f32[128,384], index: 3, kind: input, shape index: {}]   ;;  %s4280_s4 = inlined_call_operand.vmem [shape: f32[1,384], index: 4, kind: input, shape index: {}]   ;;  %s4281_s5 = inlined_call_operand.hbm [shape: f32[128,128], index: 5, kind: input, shape index: {}]   ;;  %s4282_s6 = inlined_call_operand.vmem [shape: f32[1,128], index: 6, kind: input, shape index: {}]   ;;  %s4283_s7 = inlined_call_operand.vmem [shape: f32[1,128], index: 7, kind: input, shape index: {}]   ;;  %s4284_s8 = inlined_call_operand.vmem [shape: f32[1,128], index: 8, kind: input, shape index: {}]   ;;  %s4285_s9 = inlined_call_operand.hbm [shape: f32[2,16,128], index: 9, kind: output, shape index: {}]  }
   0x1   :  { %4296 = sst [smem:[#allocation17_spill]] %s4277_s1 }
   0x2   :  { %4297 = sst [smem:[#allocation18_spill]] %s4285_s9 }
   0x3   :  { %14 = vsyncpa [#allocation3], 0 }
   0x4   :  { %16 = vsyncpa [#allocation3 + $0x1], 0 }
   0x5   :  { %17 = vsyncpa [#allocation6], 0 }
   0x6   :  { %18 = vsyncpa [#allocation9], 0 }
   0x7   :  { %19 = vsyncpa [#allocation4], 0 }
   0x8   :  { %21 = vsyncpa [#allocation4 + $0x1], 0  ;;  %s3646_s30 = smov 0   ;;  %s3648_s10 = smov 0  }
   0x9   :  { %s3650_s11 = smov 0   ;;  %s3652_s12 = smov 0  }
   0xa LB: > { %4298 = sst [smem:[#allocation15_spill]] %s3565_s30  ;;  %s3667_s13 = sadd.s32 4294967295, %s3577_s12   ;;  %s3577_s12 = sphi %s3652_s12, %s4327_s12   ;;  %s3573_s11 = sphi %s3650_s11, %s4326_s11   ;;  %s3569_s10 = sphi %s3648_s10, %s4325_s10   ;;  %s3565_s30 = sphi %s3646_s30, %s4324_s30  }
   0xb   : > { %s2851_s14 = sadd.s32 4294967294, %s3577_s12   ;;  %p47_p0 = scmp.ne.s32.totalorder %s3569_s10, %s3565_s30 }
   0xc   : > { %p4286_p1 = scmp.eq.s32.totalorder %s3667_s13, 0  ;;  %p250_p3 = scmp.eq.s32.totalorder %s2851_s14, 1 }
   0xd   : > { %p2852_p5 = scmp.ge.s32.totalorder %s3577_s12, 1  ;;  %p257_p7 = scmp.lt.s32.totalorder %s3577_s12, 3 }
   0xe   : > { %p3676_p4 = por %p4286_p1, %p47_p0  ;;  %p3681_p6 = por %p250_p3, %p47_p0 }
   0xf   : > { %p3686_p8 = pnand %p2852_p5, %p257_p7  ;;  %s3579_s18 = smov [#allocation5]  }
  0x10   : > { %s4299_s15 = scalar_select %p3676_p4, 1, 0 }
  0x11   : > { %s4300_s16 = scalar_select %p3681_p6, 1, 0 }
  0x12   : > { %s4302_s17 = scalar_select %p3686_p8, 1, 0 }
  0x13   : > { %4301 = sst [smem:[#allocation16_spill]] %s4300_s16  ;;  %s269_s19 = sshll.u32 %s3579_s18, 4  ;;  %s3690_s19 = int_to_ptr.vmem [resolvable:$true] %s269_s19 }
  0x14   : > { %p3263_p9 = pneg %p3686_p8  ;;  %s3580_s21 = smov [#allocation7]  }
  0x15   : > { %s282_s22 = sshll.u32 %s3580_s21, 4  ;;  %s4304_s1 = sld [smem:[#allocation17_spill]]  ;;  %s3701_s22 = int_to_ptr.vmem [resolvable:$true] %s282_s22 }
  0x16   : > { %p3697_p11 = pnand %p3263_p9, %p4286_p1 }
  0x18   : > { %p3711_p13 = pneg %p3697_p11 }
  0x1b   : > { %s3389_s25 = scalar_lea.hbm %s4304_s1, 256 }
  0x1c   : > { %p3390_p12 = scmp.ne.s32.totalorder %s4304_s1, %s3389_s25  ;;  %p3396_p5 = scmp.lt.u32.totalorder %s3389_s25, %s4304_s1 }
  0x1e   : > { %p3392_p0 = pnand %p3711_p13, %p3390_p12 }
  0x20   : > { %p3393_p3 = pneg %p3392_p0 }
  0x22   : > { %p3398_p7 = pnand %p3396_p5, %p3393_p3 }
  0x24   : > { %3401 = shalt.err (!%p3398_p7)
}
  0x25   : > { %s3402_s18 = scalar_lea.vmem %s3690_s19, 256  ;;  %p3410_p2 = scmp.lt.s32.totalorder %s3690_s19, %s3690_s19 }
  0x26   : > { %p3403_p9 = scmp.ne.s32.totalorder %s3690_s19, %s3402_s18  ;;  %p3411_p6 = scmp.lt.s32.totalorder %s3402_s18, %s3402_s18 }
  0x28   : > { %p3405_p10 = pnand %p3403_p9, %p3711_p13  ;;  %p3412_p12 = por %p3411_p6, %p3410_p2 }
  0x2a   : > { %p3406_p1 = pneg %p3405_p10 }
  0x2c   : > { %p3413_p0 = pnand %p3412_p12, %p3406_p1 }
  0x2e   : > { %3416 = shalt.err (!%p3413_p0)
}
  0x2f   : > { %s4289_s21 = smov 128   ;;  %s4291_s23 = smov 8  }
  0x30   : > { %3266 = dma.hbm_to_vmem [thread:$0]  (!%p3697_p11), %s4304_s1, 256, %s3690_s19, [#allocation6], %s4289_s21, %s4289_s21, %s4291_s23  }
  0x31   : > { %s3417_s29 = scalar_lea.hbm %s4279_s3, 6144 }
  0x32   : > { %p3418_p1 = scmp.ne.s32.totalorder %s4279_s3, %s3417_s29  ;;  %p3424_p10 = scmp.lt.u32.totalorder %s3417_s29, %s4279_s3 }
  0x34   : > { %p3420_p2 = pnand %p3418_p1, %p3711_p13 }
  0x36   : > { %p3421_p6 = pneg %p3420_p2 }
  0x38   : > { %p3426_p3 = pnand %p3424_p10, %p3421_p6 }
  0x3a   : > { %3429 = shalt.err (!%p3426_p3)
}
  0x3b   : > { %s3430_s19 = scalar_lea.vmem %s3701_s22, 6144  ;;  %p3438_p12 = scmp.lt.s32.totalorder %s3701_s22, %s3701_s22 }
  0x3c   : > { %p3431_p5 = scmp.ne.s32.totalorder %s3701_s22, %s3430_s19  ;;  %p3439_p0 = scmp.lt.s32.totalorder %s3430_s19, %s3430_s19 }
  0x3e   : > { %p3433_p7 = pnand %p3431_p5, %p3711_p13  ;;  %p3440_p1 = por %p3439_p0, %p3438_p12 }
  0x40   : > { %p3434_p9 = pneg %p3433_p7 }
  0x42   : > { %p3441_p2 = pnand %p3440_p1, %p3434_p9 }
  0x44   : > { %3444 = shalt.err (!%p3441_p2)
}
  0x45   : > { %s3583_s24 = smov 384   ;;  %s3584_s30 = smov 24  }
  0x46   : > { %3269 = dma.hbm_to_vmem [thread:$0]  (!%p3697_p11), %s4279_s3, 6144, %s3701_s22, [#allocation6], %s3583_s24, %s3583_s24, %s3584_s30  }
  0x47   : > { %s3585_s26 = smov [#allocation8]   ;;  %s3759_s29 = sadd.s32 1, %s3577_s12  }
  0x48   : > { %s298_s27 = sshll.u32 %s3585_s26, 4  ;;  %s3445_s19 = scalar_lea.hbm %s4281_s5, 2048  ;;  %s299_s27 = int_to_ptr.vmem [resolvable:$true] %s298_s27 }
  0x49   : > { %p3446_p6 = scmp.ne.s32.totalorder %s4281_s5, %s3445_s19  ;;  %p3452_p5 = scmp.lt.u32.totalorder %s3445_s19, %s4281_s5 }
  0x4b   : > { %p3448_p10 = pnand %p3446_p6, %p3711_p13 }
  0x4d   : > { %p3449_p3 = pneg %p3448_p10 }
  0x4f   : > { %p3454_p7 = pnand %p3452_p5, %p3449_p3 }
  0x51   : > { %3457 = shalt.err (!%p3454_p7)
}
  0x52   : > { %s3458_s22 = scalar_lea.vmem %s299_s27, 2048  ;;  %p3466_p1 = scmp.lt.s32.totalorder %s299_s27, %s299_s27 }
  0x53   : > { %p3459_p9 = scmp.ne.s32.totalorder %s299_s27, %s3458_s22  ;;  %p3467_p2 = scmp.lt.s32.totalorder %s3458_s22, %s3458_s22 }
  0x55   : > { %p3461_p12 = pnand %p3459_p9, %p3711_p13  ;;  %p3468_p4 = por %p3467_p2, %p3466_p1 }
  0x57   : > { %p3462_p0 = pneg %p3461_p12 }
  0x59   : > { %p3469_p8 = pnand %p3468_p4, %p3462_p0 }
  0x5b   : > { %3472 = shalt.err (!%p3469_p8)
}
  0x5c   : > { %s4306_s21 = smov 8   ;;  %s4307_s23 = smov 128  }
  0x5d   : > { %3272 = dma.hbm_to_vmem [thread:$0]  (!%p3697_p11), %s4281_s5, 2048, %s299_s27, [#allocation9], %s4307_s23, %s4307_s23, %s4306_s21  }
  0x5e   : > { %s31_s28 = ssub.s32 %s3577_s12, %s3759_s29  ;;  %s34_s20 = sadd.s32 1, %s3573_s11 }
  0x5f   : > { %p32_p4 = scmp.eq.s32.totalorder %s31_s28, 0  ;;  %p41_p8 = scmp.ne.s32.totalorder %s3573_s11, %s3569_s10 }
  0x60   : > { %p42_p13 = scmp.eq.s32.totalorder %s3577_s12, 0  ;;  %p3284_p6 = scmp.lt.s32.totalorder %s3577_s12, 2 }
  0x61   : > { %s3790_s24 = scalar_select %p32_p4, %s3573_s11, %s34_s20  }
  0x62   : > { %p43_p10 = por %p42_p13, %p41_p8  ;;  %p4308_p3 = scmp.eq.s32.totalorder %s3667_s13, 1 }
  0x63   : > { %s321_s16 = sand.u32 1, %s3573_s11   ;;  %s2915_s25 = sshll.u32 %s3577_s12, 8 }
  0x64   : > { %p3794_p5 = por %p4308_p3, %p41_p8  ;;  %s2857_s26 = sshll.u32 %s321_s16, 4 }
  0x65   : > { %s3803_s27 = scalar_lea.hbm %s4276_s0, %s2915_s25  ;;  %s325_s19 = scalar_lea.vmem [#allocation2], %s2857_s26 }
  0x66   : > { %s332_s22 = sshll.u32 %s325_s19, 4  ;;  %p3805_p11 = pnand %p3284_p6, %p43_p10  ;;  %s3809_s22 = int_to_ptr.vmem [resolvable:$true] %s332_s22 }
  0x67   : > { %s3811_s9 = scalar_lea.sflag [#allocation3], %s321_s16  ;;  %s3473_s28 = scalar_lea.hbm %s3803_s27, 256 }
  0x68   : > { %p3474_p7 = scmp.ne.s32.totalorder %s3803_s27, %s3473_s28  ;;  %p3475_p9 = pneg %p3805_p11 }
  0x69   : > { %s3478_s26 = scalar_lea.hbm %s4276_s0, 512  ;;  %p3479_p1 = scmp.lt.u32.totalorder %s3803_s27, %s4276_s0 }
  0x6a   : > { %p3476_p12 = pnand %p3475_p9, %p3474_p7  ;;  %p3480_p2 = scmp.lt.u32.totalorder %s3478_s26, %s3473_s28 }
  0x6b   : > { %p3482_p8 = scmp.lt.u32.totalorder %s3473_s28, %s3803_s27 }
  0x6c   : > { %p3477_p0 = pneg %p3476_p12  ;;  %p3481_p4 = por %p3480_p2, %p3479_p1 }
  0x6e   : > { %p3483_p13 = por %p3482_p8, %p3481_p4 }
  0x70   : > { %p3484_p6 = pnand %p3483_p13, %p3477_p0 }
  0x72   : > { %3487 = shalt.err (!%p3484_p6)
}
  0x73   : > { %s3488_s16 = scalar_lea.vmem %s3809_s22, 256  ;;  %s3586_s19 = smov [#allocation2]  }
  0x74   : > { %p3489_p10 = scmp.ne.s32.totalorder %s3809_s22, %s3488_s16  ;;  %s3493_s20 = sshll.u32 %s3586_s19, 4  ;;  %s3494_s20 = int_to_ptr.vmem [resolvable:$false] %s3493_s20 }
  0x75   : > { %s3495_s25 = scalar_lea.vmem %s3494_s20, 512  ;;  %p3496_p12 = scmp.lt.s32.totalorder %s3809_s22, %s3494_s20 }
  0x76   : > { %p3491_p3 = pnand %p3489_p10, %p3475_p9  ;;  %p3497_p1 = scmp.lt.s32.totalorder %s3495_s25, %s3488_s16 }
  0x78   : > { %p3492_p7 = pneg %p3491_p3  ;;  %p3498_p2 = por %p3497_p1, %p3496_p12 }
  0x7a   : > { %p3499_p4 = pnand %p3498_p2, %p3492_p7 }
  0x7c   : > { %3502 = shalt.err (!%p3499_p4)
}
  0x7d   : > { %3276 = dma.hbm_to_vmem [thread:$0]  (!%p3805_p11), %s3803_s27, 256, %s3809_s22, %s3811_s9, %s4307_s23, %s4307_s23, %s4306_s21  }
  0x7e   : > { %p4311_p9 = scmp.ne.s32.totalorder %s4302_s17, 0 }
  0x7f   : > { %s3845_s28 = sand.u32 (!%p4311_p9), 1, %s3569_s10   ;;  %p4312_p0 = scmp.ne.s32.totalorder (!%p4311_p9), %s4299_s15, 0 }
  0x80   : > { %350 = sbr.rel (%p4311_p9) target bundleno = 2013 (0x7dd), region = 56  ;;  %s2861_s26 = sshll.u32 (!%p4311_p9), %s3845_s28, 4 }
  0x81   : > { %s353_s14 = scalar_lea.sflag (!%p4311_p9), [#allocation3], %s3845_s28  ;;  %s3851_s1 = scalar_lea.vmem (!%p4311_p9), [#allocation2], %s2861_s26 }
  0x87   : > { %3548 = dma.done.wait (%p4312_p0), %s353_s14, 256  }
  0x88   : > { %3550 = vsyncadd (%p4312_p0), %s353_s14, 4294967040  ;;  %p4313_p11 = scmp.eq.s32.totalorder %s3667_s13, 0 }
  0x8a   : > { %3552 = dma.done.wait (%p4313_p11), [#allocation6], 6400   ;;  %p4314_p8 = pmov %p4313_p11 }
  0x8c   : > { %3554 = vsyncadd (%p4314_p8), [#allocation6], 4294960896  ;;  %p4315_p13 = pmov %p4314_p8 }
  0x8d   : > { %p4316_p6 = pmov %p4314_p8 }
  0x8e   : > { %3556 = dma.done.wait (%p4315_p13), [#allocation9], 2048  }
  0x8f   : > { %3558 = vsyncadd (%p4316_p6), [#allocation9], 4294965248  ;;  %v3587_v0 = vmov 0.0   ;;  %v412_v1 = vld [vmem:[#allocation7 + $0x8] sm:$0xff]  ;;  %v415_v2 = vld [vmem:[#allocation7 + $0x20] sm:$0xff]  ;;  %v461_v60 = vlaneseq  ;;  %s3588_s21 = smov 64  }
  0x90   : > { %540 = vmatprep.mubr.f32.mxu0 %v3587_v0  ;;  %v411_v3 = vld [vmem:[#allocation7] sm:$0xff]  ;;  %v3111_v4 = vpack.c.bf16 %v415_v2, %v412_v1  ;;  %v414_v5 = vld [vmem:[#allocation7 + $0x18] sm:$0xff]  ;;  %v421_v7 = vld [vmem:[#allocation7 + $0x50] sm:$0xff]  ;;  %s3589_s23 = smov 96   ;;  %s3590_s27 = smov 32   ;;  %vm1517_vm0 = vcmask 261120  }
  0x91   : > { %v418_v6 = vld [vmem:[#allocation7 + $0x38] sm:$0xff]  ;;  %v3113_v8 = vpack.c.bf16 %v414_v5, %v411_v3  ;;  %v417_v10 = vld [vmem:[#allocation7 + $0x30] sm:$0xff]  ;;  %v420_v11 = vld [vmem:[#allocation7 + $0x48] sm:$0xff]  ;;  %v3872_v61 = vshrl.u32 %v461_v60, 7  ;;  %p406_p10 = scmp.lt.s32.totalorder %s3667_s13, 1  ;;  %vm1866_vm2 = vcmask 130048  }
  0x92   : > { %v3115_v9 = vpack.c.bf16 %v421_v7, %v418_v6  ;;  %v424_v12 = vld [vmem:[#allocation7 + $0x68] sm:$0xff]  ;;  %3112 = vmatprep.subr.bf16.mxu0 %v3111_v4  ;;  %v427_v13 = vld [vmem:[#allocation7 + $0x80] sm:$0xff]  ;;  %v3117_v14 = vpack.c.bf16 %v420_v11, %v417_v10  ;;  %v426_v17 = vld [vmem:[#allocation7 + $0x78] sm:$0xff]  ;;  %vm2577_vm3 = vcmask 523264   ;;  %vm2580_vm4 = vcmask 785408   ;;  %s2916_s17 = sshll.u32 %s3667_s13, 8 }
  0x93   : > { %3114 = vmatpush1.bf16.msra.mxu0 %v3113_v8  ;;  %v3119_v15 = vpack.c.bf16 %v427_v13, %v424_v12  ;;  %v423_v16 = vld [vmem:[#allocation7 + $0x60] sm:$0xff]  ;;  %v430_v18 = vld [vmem:[#allocation7 + $0x98] sm:$0xff]  ;;  %v433_v19 = vld [vmem:[#allocation7 + $0xb0] sm:$0xff]  ;;  %v467_v1 = vsub.s32 1, %v3872_v61  ;;  %v463_v12 = vsub.s32 0, %v3872_v61  ;;  %s407_s22 = scalar_select %p406_p10, %s3667_s13, 1 }
  0x94   : > { %3116 = vmatprep.subr.bf16.mxu0 %v3115_v9  ;;  %v3121_v20 = vpack.c.bf16 %v426_v17, %v423_v16  ;;  %v3123_v21 = vpack.c.bf16 %v433_v19, %v430_v18  ;;  %v429_v22 = vld [vmem:[#allocation7 + $0x90] sm:$0xff]  ;;  %v432_v23 = vld [vmem:[#allocation7 + $0xa8] sm:$0xff]  ;;  %v439_v25 = vld [vmem:[#allocation7 + $0xe0] sm:$0xff]  ;;  %s4319_s9 = sld [smem:[#allocation18_spill]]  ;;  %s2727_s13 = scalar_lea.sflag [#allocation4], %s3845_s28 }
  0x95   : > { %v436_v24 = vld [vmem:[#allocation7 + $0xc8] sm:$0xff]  ;;  %v409_v26 = vld [vmem:[%s3851_s1] sm:$0xff]  ;;  %v3125_v27 = vpack.c.bf16 %v432_v23, %v429_v22  ;;  %v438_v30 = vld [vmem:[#allocation7 + $0xd8] sm:$0xff]  ;;  %s408_s16 = scalar_lea.vmem %s4278_s2, %s407_s22 }
  0x96   : > { %3017 = vmatprep.mubr.f32.mxu1 %v409_v26  ;;  %v3127_v28 = vpack.c.bf16 %v439_v25, %v436_v24  ;;  %v435_v29 = vld [vmem:[#allocation7 + $0xc0] sm:$0xff]  ;;  %v442_v31 = vld [vmem:[#allocation7 + $0xf8] sm:$0xff]  ;;  %v445_v32 = vld [vmem:[#allocation7 + $0x110] sm:$0xff] }
  0x97   : > { %3118 = vmatpush1.bf16.msra.mxu0 %v3117_v14  ;;  %v3129_v33 = vpack.c.bf16 %v438_v30, %v435_v29  ;;  %v3131_v34 = vpack.c.bf16 %v445_v32, %v442_v31  ;;  %v441_v35 = vld [vmem:[#allocation7 + $0xf0] sm:$0xff]  ;;  %v444_v36 = vld [vmem:[#allocation7 + $0x108] sm:$0xff]  ;;  %v451_v38 = vld [vmem:[#allocation7 + $0x140] sm:$0xff]  ;;  %v3592_v30 = vmov 1934713408  }
  0x98   : > { %3120 = vmatprep.subr.bf16.mxu0 %v3119_v15  ;;  %v448_v37 = vld [vmem:[#allocation7 + $0x128] sm:$0xff]  ;;  %v3133_v39 = vpack.c.bf16 %v444_v36, %v441_v35  ;;  %v447_v41 = vld [vmem:[#allocation7 + $0x120] sm:$0xff]  ;;  %v450_v42 = vld [vmem:[#allocation7 + $0x138] sm:$0xff]  ;;  %v696_v31 = vunpack.c.l.s4 %v3592_v30 }
  0x99   : > { %v3135_v40 = vpack.c.bf16 %v451_v38, %v448_v37  ;;  %v454_v43 = vld [vmem:[#allocation7 + $0x158] sm:$0xff]  ;;  %v457_v44 = vld [vmem:[#allocation7 + $0x170] sm:$0xff]  ;;  %v3137_v45 = vpack.c.bf16 %v450_v42, %v447_v41  ;;  %v456_v48 = vld [vmem:[#allocation7 + $0x168] sm:$0xff] }
  0x9a   : > { %v3139_v46 = vpack.c.bf16 %v457_v44, %v454_v43  ;;  %v453_v47 = vld [vmem:[#allocation7 + $0x150] sm:$0xff]  ;;  %v3869_v50 = vld [vmem:[%s3851_s1 + $0x8] sm:$0xff]  ;;  %v419_v53 = vld [vmem:[#allocation7 + $0x40] sm:$0xff]  ;;  %v697_v35 = vunpack.c.0.s8 %v696_v31  ;;  %s4230_s18 = scalar_lea.hbm %s4319_s9, %s2916_s17 }
  0x9b   : > { %3122 = vmatpush1.bf16.msra.mxu0 %v3121_v20  ;;  %v3141_v49 = vpack.c.bf16 %v456_v48, %v453_v47  ;;  %v413_v51 = vld [vmem:[#allocation7 + $0x10] sm:$0xff]  ;;  %v416_v52 = vld [vmem:[#allocation7 + $0x28] sm:$0xff]  ;;  %v422_v55 = vld [vmem:[#allocation7 + $0x58] sm:$0xff] }
  0x9c   : > { %3124 = vmatprep.subr.bf16.mxu0 %v3123_v21  ;;  %v3143_v54 = vpack.c.bf16 %v416_v52, %v413_v51  ;;  %v3147_v56 = vpack.c.bf16 %v422_v55, %v419_v53  ;;  %v425_v57 = vld [vmem:[#allocation7 + $0x70] sm:$0xff]  ;;  %v428_v58 = vld [vmem:[#allocation7 + $0x88] sm:$0xff]  ;;  %v431_v62 = vld [vmem:[#allocation7 + $0xa0] sm:$0xff]  ;;  %v3915_v43 = vsub.s32 %v697_v35, %v3872_v61 }
  0x9d   : > { %v3151_v59 = vpack.c.bf16 %v428_v58, %v425_v57  ;;  %v434_v63 = vld [vmem:[#allocation7 + $0xb8] sm:$0xff]  ;;  %v3878_v2 = vld [vmem:[%s4280_s4] sm:$0x7]  ;;  %v440_v4 = vld [vmem:[#allocation7 + $0xe8] sm:$0xff] }
  0x9e   : > { %3144 = vmatprep.subr.bf16.mxu1 %v3143_v54  ;;  %v437_v3 = vld [vmem:[#allocation7 + $0xd0] sm:$0xff]  ;;  %v468_v6 = vrot.slane %v3878_v2, %v467_v1  ;;  %v443_v8 = vld [vmem:[#allocation7 + $0x100] sm:$0xff]  ;;  %v446_v9 = vld [vmem:[#allocation7 + $0x118] sm:$0xff]  ;;  %v464_v16 = vrot.slane %v3878_v2, %v463_v12 }
  0x9f   : > { %3126 = vmatpush1.bf16.msra.mxu0 %v3125_v27  ;;  %3146 = vmatpush3.bf16.msra.mxu1 %v3143_v54  ;;  %v3159_v5 = vpack.c.bf16 %v440_v4, %v437_v3  ;;  %v3163_v11 = vpack.c.bf16 %v446_v9, %v443_v8  ;;  %v449_v18 = vld [vmem:[#allocation7 + $0x130] sm:$0xff]  ;;  %v452_v19 = vld [vmem:[#allocation7 + $0x148] sm:$0xff]  ;;  %v455_v22 = vld [vmem:[#allocation7 + $0x160] sm:$0xff] }
  0xa0   : > { %3128 = vmatprep.subr.bf16.mxu0 %v3127_v28  ;;  %3148 = vmatprep.subr.bf16.mxu1 %v3147_v56  ;;  %v3167_v20 = vpack.c.bf16 %v452_v19, %v449_v18  ;;  %v458_v23 = vld [vmem:[#allocation7 + $0x178] sm:$0xff]  ;;  %v3591_v28 = vmov 1983009808   ;;  %vm4007_vm1 = vmpackc.low %vm1517_vm0, %vm1517_vm0 }
  0xa1   : > { %v3171_v24 = vpack.c.bf16 %v458_v23, %v455_v22  ;;  %v664_v29 = vunpack.c.l.s4 %v3591_v28 }
  0xa3   : > { %3130 = vmatpush1.bf16.msra.mxu0 %v3129_v33  ;;  %3150 = vmatpush3.bf16.msra.mxu1 %v3147_v56  ;;  %v665_v32 = vunpack.c.0.s8 %v664_v29 }
  0xa4   : > { %3132 = vmatprep.subr.bf16.mxu0 %v3131_v34  ;;  %3152 = vmatprep.subr.bf16.mxu1 %v3151_v59 }
  0xa5   : > { %v3912_v36 = vsub.s32 %v665_v32, %v3872_v61 }
  0xa7   : > { %3134 = vmatpush1.bf16.msra.mxu0 %v3133_v39  ;;  %3154 = vmatpush3.bf16.msra.mxu1 %v3151_v59 }
  0xa8   : > { %3136 = vmatprep.subr.bf16.mxu0 %v3135_v40 }
  0xab   : > { %3138 = vmatpush1.bf16.msra.mxu0 %v3137_v45 }
  0xac   : > { %3140 = vmatprep.subr.bf16.mxu0 %v3139_v46 }
  0xaf   : > { %3142 = vmatpush1.bf16.msra.mxu0 %v3141_v49 }
  0xb2   : > { %541 = vmatmul.mubr.f32.vlgmr.msra.gmra.mrb[0].mxu0 %v409_v26 }
  0xb3   : > { %546 = vmatprep.mubr.f32.mxu0 %v3587_v0  ;;  %v3155_v0 = vpack.c.bf16 %v434_v63, %v431_v62 }
  0xb5   : > { %3156 = vmatprep.subr.bf16.mxu1 %v3155_v0 }
  0xb6   : > { %547 = vmatmul.mubr.f32.gmra.mrb[2].mxu0 %v3869_v50  ;;  %3158 = vmatpush3.bf16.msra.mxu1 %v3155_v0 }
  0xb7   : > { %3160 = vmatprep.subr.bf16.mxu1 %v3159_v5 }
  0xba   : > { %3162 = vmatpush3.bf16.msra.mxu1 %v3159_v5 }
  0xbb   : > { %3164 = vmatprep.subr.bf16.mxu1 %v3163_v11 }
  0xbe   : > { %3166 = vmatpush3.bf16.msra.mxu1 %v3163_v11 }
  0xbf   : > { %3168 = vmatprep.subr.bf16.mxu1 %v3167_v20 }
  0xc2   : > { %3170 = vmatpush3.bf16.msra.mxu1 %v3167_v20 }
  0xc3   : > { %3172 = vmatprep.subr.bf16.mxu1 %v3171_v24 }
  0xc6   : > { %3174 = vmatpush3.bf16.msra.mxu1 %v3171_v24 }
  0xc9   : > { %3018 = vmatmul.mubr.f32.vlgmr.msra.gmra.mrb[0].mxu1 %v3869_v50 }
 0x185   : > { %v542_v7 = vpop.f32.mrb[0].mxu0 }
 0x186   : > { %v544_v10 = vpop.f32.mrb[1].mxu0  ;;  %v543_v21 = vadd.f32 %v542_v7, %v464_v16 }
 0x187   : > { %v545_v13 = vadd.f32 %v544_v10, %v468_v6 }
 0x188   : > { %v3894_v25 = vmul.f32 0.17677669, %v543_v21 }
 0x189   : > { %v548_v14 = vpop.f32.mrb[2].mxu0  ;;  %941 = vrot.lane.b32.xlu1 %v545_v13, %s3588_s21  ;;  %935 = vrot.lane.b32.xlu0 %v545_v13, %s3589_s23 }
 0x18a   : > { %v550_v15 = vpop.f32.mrb[3].mxu0  ;;  %v549_v26 = vadd.f32 %v548_v14, %v464_v16 }
 0x18b   : > { %v3885_v17 = vadd.f32 %v550_v15, %v468_v6 }
 0x18c   : > { %v3900_v27 = vmul.f32 0.17677669, %v549_v26 }
 0x18d   : > { %943 = vrot.lane.b32.xlu1 %v3885_v17, %s3588_s21  ;;  %947 = vrot.lane.b32.xlu0 %v545_v13, %s3590_s27 }
 0x191   : > { %949 = vrot.lane.b32.xlu1 %v3885_v17, %s3590_s27  ;;  %937 = vrot.lane.b32.xlu0 %v3885_v17, %s3589_s23 }
 0x195   : > { %649 = vrot.lane.b32.xlu1 %v3894_v25, %s3588_s21  ;;  %643 = vrot.lane.b32.xlu0 %v3894_v25, %s3589_s23 }
 0x199   : > { %645 = vrot.lane.b32.xlu1 %v3900_v27, %s3589_s23  ;;  %655 = vrot.lane.b32.xlu0 %v3894_v25, %s3590_s27 }
 0x19d   : > { %657 = vrot.lane.b32.xlu1 %v3900_v27, %s3590_s27  ;;  %651 = vrot.lane.b32.xlu0 %v3900_v27, %s3588_s21 }
 0x1fb   : > { %v942_v33 = vpop.permute.xlu1 %941  ;;  %v936_v34 = vpop.permute.xlu0 %935 }
 0x1fc   : > { %v953_v37 = vcombine.low %v545_v13, %v942_v33  ;;  %v954_v38 = vcombine.high %v545_v13, %v942_v33 }
 0x1fe   : > { %v961_v44 = vrot.slane %v953_v37, %v3912_v36  ;;  %v968_v45 = vrot.slane %v954_v38, %v3912_v36 }
 0x1ff   : > { %v944_v39 = vpop.permute.xlu1 %943  ;;  %v948_v40 = vpop.permute.xlu0 %947 }
 0x200   : > { %v969_v41 = vcombine.low %v936_v34, %v948_v40  ;;  %v970_v42 = vcombine.high %v936_v34, %v948_v40  ;;  %v1021_v48 = vcombine.low %v3885_v17, %v944_v39  ;;  %v1022_v49 = vcombine.high %v3885_v17, %v944_v39 }
 0x202   : > { %v977_v46 = vrot.slane %v969_v41, %v3912_v36  ;;  %v984_v47 = vrot.slane %v970_v42, %v3912_v36  ;;  %v1029_v63 = vrot.slane %v1021_v48, %v3912_v36  ;;  %v1036_v0 = vrot.slane %v1022_v49, %v3912_v36 }
 0x203   : > { %v950_v50 = vpop.permute.xlu1 %949  ;;  %v938_v51 = vpop.permute.xlu0 %937 }
 0x204   : > { %v985_v52 = vcombine.low %v961_v44, %v977_v46  ;;  %v986_v53 = vcombine.high %v961_v44, %v977_v46  ;;  %v1001_v54 = vcombine.low %v968_v45, %v984_v47  ;;  %v1002_v55 = vcombine.high %v968_v45, %v984_v47 }
 0x205   : > { %v1037_v56 = vcombine.low %v938_v51, %v950_v50  ;;  %v1038_v57 = vcombine.high %v938_v51, %v950_v50 }
 0x206   : > { %v993_v58 = vrot.slane %v985_v52, %v3915_v43  ;;  %v1000_v59 = vrot.slane %v986_v53, %v3915_v43  ;;  %v1009_v60 = vrot.slane %v1001_v54, %v3915_v43  ;;  %v1016_v62 = vrot.slane %v1002_v55, %v3915_v43 }
 0x207   : > { %v1045_v1 = vrot.slane %v1037_v56, %v3912_v36  ;;  %v1052_v3 = vrot.slane %v1038_v57, %v3912_v36  ;;  %v650_v4 = vpop.permute.xlu1 %649  ;;  %v644_v5 = vpop.permute.xlu0 %643 }
 0x208   : > { %v1089_v6 = vcombine.low %v993_v58, %v1000_v59  ;;  %v2871_v7 = vcombine.high %v993_v58, %v1000_v59  ;;  %v1105_v8 = vcombine.low %v1009_v60, %v1016_v62  ;;  %v2872_v9 = vcombine.high %v1009_v60, %v1016_v62 }
 0x209   : > { %v1053_v10 = vcombine.low %v1029_v63, %v1045_v1  ;;  %v1054_v11 = vcombine.high %v1029_v63, %v1045_v1  ;;  %v1069_v12 = vcombine.low %v1036_v0, %v1052_v3  ;;  %v1070_v13 = vcombine.high %v1036_v0, %v1052_v3 }
 0x20a   : > { %v3932_v14 = vrot.slane %v1089_v6, %v3912_v36  ;;  %v3935_v15 = vrot.slane %v2871_v7, %v3912_v36  ;;  %v3938_v16 = vrot.slane %v1105_v8, %v3912_v36  ;;  %v3941_v17 = vrot.slane %v2872_v9, %v3912_v36 }
 0x20b   : > { %v1061_v18 = vrot.slane %v1053_v10, %v3915_v43  ;;  %v1068_v19 = vrot.slane %v1054_v11, %v3915_v43  ;;  %v1077_v20 = vrot.slane %v1069_v12, %v3915_v43  ;;  %v1084_v21 = vrot.slane %v1070_v13, %v3915_v43  ;;  %v646_v22 = vpop.permute.xlu1 %645  ;;  %v656_v23 = vpop.permute.xlu0 %655 }
 0x20c   : > { %v661_v24 = vcombine.low %v3894_v25, %v650_v4  ;;  %v662_v26 = vcombine.high %v3894_v25, %v650_v4  ;;  %v677_v28 = vcombine.low %v644_v5, %v656_v23  ;;  %v678_v29 = vcombine.high %v644_v5, %v656_v23 }
 0x20d   : > { %v1157_v30 = vcombine.low %v1061_v18, %v1068_v19  ;;  %v2873_v31 = vcombine.high %v1061_v18, %v1068_v19  ;;  %v1173_v32 = vcombine.low %v1077_v20, %v1084_v21  ;;  %v2874_v33 = vcombine.high %v1077_v20, %v1084_v21 }
 0x20e   : > { %v669_v34 = vrot.slane %v661_v24, %v3912_v36  ;;  %v676_v35 = vrot.slane %v662_v26, %v3912_v36  ;;  %v685_v37 = vrot.slane %v677_v28, %v3912_v36  ;;  %v692_v38 = vrot.slane %v678_v29, %v3912_v36 }
 0x20f   : > { %v3954_v39 = vrot.slane %v1157_v30, %v3912_v36  ;;  %v3957_v40 = vrot.slane %v2873_v31, %v3912_v36  ;;  %v3960_v25 = vrot.slane %v1173_v32, %v3912_v36  ;;  %v3963_v41 = vrot.slane %v2874_v33, %v3912_v36  ;;  %v658_v42 = vpop.permute.xlu1 %657  ;;  %v652_v44 = vpop.permute.xlu0 %651 }
 0x210   : > { %v693_v45 = vcombine.low %v669_v34, %v685_v37  ;;  %v694_v46 = vcombine.high %v669_v34, %v685_v37  ;;  %v709_v47 = vcombine.low %v676_v35, %v692_v38  ;;  %v710_v48 = vcombine.high %v676_v35, %v692_v38 }
 0x211   : > { %v745_v49 = vcombine.low %v646_v22, %v658_v42  ;;  %v746_v50 = vcombine.high %v646_v22, %v658_v42  ;;  %v729_v51 = vcombine.low %v3900_v27, %v652_v44  ;;  %v730_v52 = vcombine.high %v3900_v27, %v652_v44 }
 0x212   : > { %v701_v53 = vrot.slane %v693_v45, %v3915_v43  ;;  %v708_v54 = vrot.slane %v694_v46, %v3915_v43  ;;  %v717_v55 = vrot.slane %v709_v47, %v3915_v43  ;;  %v724_v56 = vrot.slane %v710_v48, %v3915_v43 }
 0x213   : > { %v753_v57 = vrot.slane %v745_v49, %v3912_v36  ;;  %v760_v58 = vrot.slane %v746_v50, %v3912_v36  ;;  %v737_v59 = vrot.slane %v729_v51, %v3912_v36  ;;  %v744_v60 = vrot.slane %v730_v52, %v3912_v36 }
 0x214   : > { %v797_v62 = vcombine.low %v701_v53, %v708_v54  ;;  %v2867_v63 = vcombine.high %v701_v53, %v708_v54  ;;  %v813_v27 = vcombine.low %v717_v55, %v724_v56  ;;  %v2868_v0 = vcombine.high %v717_v55, %v724_v56 }
 0x215   : > { %v761_v1 = vcombine.low %v737_v59, %v753_v57  ;;  %v762_v3 = vcombine.high %v737_v59, %v753_v57  ;;  %v777_v4 = vcombine.low %v744_v60, %v760_v58  ;;  %v778_v5 = vcombine.high %v744_v60, %v760_v58 }
 0x216   : > { %v3976_v6 = vrot.slane %v797_v62, %v3912_v36  ;;  %v3979_v7 = vrot.slane %v2867_v63, %v3912_v36  ;;  %v3982_v8 = vrot.slane %v813_v27, %v3912_v36  ;;  %v828_v9 = vrot.slane %v2868_v0, %v3912_v36 }
 0x217   : > { %v769_v10 = vrot.slane %v761_v1, %v3915_v43  ;;  %v776_v11 = vrot.slane %v762_v3, %v3915_v43  ;;  %v785_v12 = vrot.slane %v777_v4, %v3915_v43  ;;  %v792_v13 = vrot.slane %v778_v5, %v3915_v43 }
 0x218   : > { %v1121_v18 = vcombine.low %v3932_v14, %v3935_v15  ;;  %v1137_v19 = vcombine.low %v3938_v16, %v3941_v17  ;;  %v1189_v20 = vcombine.low %v3954_v39, %v3957_v40  ;;  %v1205_v21 = vcombine.low %v3960_v25, %v3963_v41 }
 0x219   : > { %v865_v22 = vcombine.low %v769_v10, %v776_v11  ;;  %v2869_v23 = vcombine.high %v769_v10, %v776_v11  ;;  %v881_v24 = vcombine.low %v785_v12, %v792_v13  ;;  %v2870_v26 = vcombine.high %v785_v12, %v792_v13 }
 0x21a   : > { %v1129_v28 = vrot.slane %v1121_v18, %v3915_v43  ;;  %v1145_v29 = vrot.slane %v1137_v19, %v3915_v43  ;;  %v1197_v30 = vrot.slane %v1189_v20, %v3915_v43  ;;  %v1213_v31 = vrot.slane %v1205_v21, %v3915_v43  ;;  %v3019_v19 = vpop.f32.mrb[0].mxu1  ;;  %v631_v21 = vld [vmem:[#allocation5 + $0x8] sm:$0xff] }
 0x21b   : > { %v872_v32 = vrot.slane %v865_v22, %v3912_v36  ;;  %v880_v33 = vrot.slane %v2869_v23, %v3912_v36  ;;  %v888_v34 = vrot.slane %v881_v24, %v3912_v36  ;;  %v896_v35 = vrot.slane %v2870_v26, %v3912_v36  ;;  %v619_v20 = vpop.f32.mrb[1].mxu1  ;;  %v2866_v22 = vld [vmem:[%s408_s16] ss:$0 sm:$0xff] }
 0x21c   : > { %v1153_v37 = vcombine.low %v1129_v28, %v1145_v29  ;;  %v1221_v38 = vcombine.low %v1197_v30, %v1213_v31  ;;  %v1154_v42 = vcombine.high %v1129_v28, %v1145_v29  ;;  %v1222_v44 = vcombine.high %v1197_v30, %v1213_v31  ;;  %v630_v23 = vld [vmem:[#allocation5] sm:$0xff] }
 0x21d   : > { %v897_v45 = vcombine.low %v872_v32, %v880_v33  ;;  %v913_v46 = vcombine.low %v888_v34, %v896_v35  ;;  %v829_v50 = vcombine.low %v3976_v6, %v3979_v7  ;;  %v845_v51 = vcombine.low %v3982_v8, %v828_v9 }
 0x21e   : > { %v3175_v48 = vpack.c.bf16 %v1221_v38, %v1153_v37  ;;  %v3181_v49 = vpack.c.bf16 %v1222_v44, %v1154_v42  ;;  %v1122_v54 = vcombine.high %v3932_v14, %v3935_v15  ;;  %v1138_v55 = vcombine.high %v3938_v16, %v3941_v17 }
 0x21f   : > { %v905_v52 = vrot.slane %v897_v45, %v3915_v43  ;;  %v921_v53 = vrot.slane %v913_v46, %v3915_v43  ;;  %v837_v56 = vrot.slane %v829_v50, %v3915_v43  ;;  %v853_v57 = vrot.slane %v845_v51, %v3915_v43 }
 0x220   : > { %3177 = vmatprep.subr.msk.bf16.mxu1 %vm4007_vm1, %v3175_v48  ;;  %v1190_v58 = vcombine.high %v3954_v39, %v3957_v40  ;;  %v1206_v59 = vcombine.high %v3960_v25, %v3963_v41  ;;  %v1136_v14 = vrot.slane %v1122_v54, %v3915_v43  ;;  %v1152_v16 = vrot.slane %v1138_v55, %v3915_v43 }
 0x221   : > { %3180 = vmatpush3.bf16.xpose.msk.msra.mxu1 %vm4007_vm1, %v3175_v48  ;;  %v861_v15 = vcombine.low %v837_v56, %v853_v57  ;;  %v929_v39 = vcombine.low %v905_v52, %v921_v53  ;;  %v862_v41 = vcombine.high %v837_v56, %v853_v57  ;;  %v830_v62 = vcombine.high %v3976_v6, %v3979_v7 }
 0x222   : > { %3183 = vmatprep.subr.msk.bf16.mxu1 %vm4007_vm1, %v3181_v49  ;;  %v1204_v17 = vrot.slane %v1190_v58, %v3915_v43  ;;  %v1220_v60 = vrot.slane %v1206_v59, %v3915_v43  ;;  %v1155_v25 = vcombine.low %v1136_v14, %v1152_v16  ;;  %v846_v63 = vcombine.high %v3982_v8, %v828_v9 }
 0x223   : > { %3024 = vmatprep.mubr.msk.f32.mxu1 %vm1517_vm0, %v861_v15  ;;  %v844_v0 = vrot.slane %v830_v62, %v3915_v43  ;;  %v898_v4 = vcombine.high %v872_v32, %v880_v33  ;;  %v914_v5 = vcombine.high %v888_v34, %v896_v35  ;;  %v930_v6 = vcombine.high %v905_v52, %v921_v53 }
 0x224   : > { %v1223_v40 = vcombine.low %v1204_v17, %v1220_v60  ;;  %v860_v1 = vrot.slane %v846_v63, %v3915_v43  ;;  %v1224_v3 = vcombine.high %v1204_v17, %v1220_v60  ;;  %v1156_v7 = vcombine.high %v1136_v14, %v1152_v16 }
 0x225   : > { %v912_v10 = vrot.slane %v898_v4, %v3915_v43  ;;  %v928_v11 = vrot.slane %v914_v5, %v3915_v43  ;;  %v640_v24 = vadd.f32 %v2866_v22, %v631_v21  ;;  %v639_v26 = vadd.f32 %v2866_v22, %v630_v23 }
 0x226   : > { %v3187_v27 = vpack.c.bf16 %v1223_v40, %v1155_v25  ;;  %v863_v8 = vcombine.low %v844_v0, %v860_v1  ;;  %v3193_v9 = vpack.c.bf16 %v1224_v3, %v1156_v7  ;;  %v864_v13 = vcombine.high %v844_v0, %v860_v1 }
 0x227   : > { %v931_v12 = vcombine.low %v912_v10, %v928_v11  ;;  %v932_v18 = vcombine.high %v912_v10, %v928_v11  ;;  %v471_v56 = vsub.s32 2, %v3872_v61 }
 0x228   : > { %3025 = vmatmul.mubr.msk.f32.vlgmr.msra.gmra.mrb[2].mxu1 %vm1517_vm0, %v929_v39 }
 0x229   : > { %3186 = vmatpush3.bf16.xpose.msk.msra.mxu1 %vm4007_vm1, %v3181_v49  ;;  %3031 = vmatprep.mubr.msk.f32.mxu1 %vm1517_vm0, %v862_v41  ;;  %v472_v58 = vrot.slane %v3878_v2, %v471_v56 }
 0x22a   : > { %3189 = vmatprep.subr.msk.bf16.mxu1 %vm4007_vm1, %v3187_v27 }
 0x22b   : > { %v4076_v59 = vadd.f32 %v619_v20, %v472_v58  ;;  %v4082_v14 = vadd.f32 %v3019_v19, %v472_v58 }
 0x230   : > { %3032 = vmatmul.mubr.msk.f32.vlgmr.msra.gmra.mrb[4].mxu1 %vm1517_vm0, %v930_v6 }
 0x231   : > { %3192 = vmatpush3.bf16.xpose.msk.msra.mxu1 %vm4007_vm1, %v3187_v27  ;;  %3038 = vmatprep.mubr.msk.f32.mxu1 %vm1517_vm0, %v863_v8 }
 0x232   : > { %3195 = vmatprep.subr.msk.bf16.mxu1 %vm4007_vm1, %v3193_v9 }
 0x238   : > { %3039 = vmatmul.mubr.msk.f32.vlgmr.msra.gmra.mrb[6].mxu1 %vm1517_vm0, %v931_v12 }
 0x239   : > { %3198 = vmatpush3.bf16.xpose.msk.msra.mxu1 %vm4007_vm1, %v3193_v9  ;;  %3045 = vmatprep.mubr.msk.f32.mxu1 %vm1517_vm0, %v864_v13 }
 0x240   : > { %3046 = vmatmul.mubr.msk.f32.vlgmr.msra.gmra.mrb[8].mxu1 %vm1517_vm0, %v932_v18 }
 0x2fb   : > { %v3026_v28 = vpop.f32.mrb[2].mxu1 }
 0x2fc   : > { %v1602_v29 = vadd.f32 %v3026_v28, %v640_v24  ;;  %v1596_v30 = vpop.f32.mrb[3].mxu1 }
 0x2fd   : > { %v1597_v31 = vadd.f32 %v1596_v30, %v639_v26 }
 0x2fe   : > { %v1870_v32 = vsel %vm1866_vm2, %v1602_v29, -inf }
 0x2ff   : > { %1871 = vmax.xlane.f32.xlu0 %v1870_v32  ;;  %v1867_v33 = vsel %vm1866_vm2, %v1597_v31, -inf }
 0x303   : > { %v3033_v34 = vpop.f32.mrb[4].mxu1  ;;  %1868 = vmax.xlane.f32.xlu0 %v1867_v33 }
 0x304   : > { %v1689_v35 = vadd.f32 %v3033_v34, %v640_v24  ;;  %v1683_v37 = vpop.f32.mrb[5].mxu1 }
 0x305   : > { %v1684_v38 = vadd.f32 %v1683_v37, %v639_v26 }
 0x306   : > { %v1876_v42 = vsel %vm1866_vm2, %v1689_v35, -inf }
 0x307   : > { %v1873_v44 = vsel %vm1866_vm2, %v1684_v38, -inf  ;;  %1877 = vmax.xlane.f32.xlu0 %v1876_v42 }
 0x308   : > { %1874 = vmax.xlane.f32.xlu1 %v1873_v44 }
 0x30b   : > { %v3040_v45 = vpop.f32.mrb[6].mxu1 }
 0x30c   : > { %v1770_v46 = vpop.f32.mrb[7].mxu1  ;;  %v1776_v48 = vadd.f32 %v3040_v45, %v640_v24 }
 0x30d   : > { %v1771_v47 = vadd.f32 %v1770_v46, %v639_v26 }
 0x30e   : > { %v1882_v51 = vsel %vm1866_vm2, %v1776_v48, -inf }
 0x30f   : > { %v1879_v49 = vsel %vm1866_vm2, %v1771_v47, -inf }
 0x310   : > { %1880 = vmax.xlane.f32.xlu1 %v1879_v49 }
 0x313   : > { %v3047_v50 = vpop.f32.mrb[8].mxu1 }
 0x314   : > { %v1857_v52 = vpop.f32.mrb[9].mxu1  ;;  %1883 = vmax.xlane.f32.xlu1 %v1882_v51  ;;  %v1863_v54 = vadd.f32 %v3047_v50, %v640_v24 }
 0x315   : > { %v1858_v53 = vadd.f32 %v1857_v52, %v639_v26 }
 0x316   : > { %v1888_v57 = vsel %vm1866_vm2, %v1863_v54, -inf }
 0x317   : > { %v1885_v55 = vsel %vm1866_vm2, %v1858_v53, -inf }
 0x318   : > { %1886 = vmax.xlane.f32.xlu0 %v1885_v55 }
 0x31c   : > { %1889 = vmax.xlane.f32.xlu0 %v1888_v57 }
 0x325   : > { %1227 = vrot.lane.b32.xlu1 %v4076_v59, %s3589_s23 }
 0x329   : > { %1233 = vrot.lane.b32.xlu1 %v4076_v59, %s3588_s21 }
 0x32d   : > { %1235 = vrot.lane.b32.xlu1 %v4082_v14, %s3588_s21 }
 0x331   : > { %1241 = vrot.lane.b32.xlu1 %v4082_v14, %s3590_s27 }
 0x332   : > { %1229 = vrot.lane.b32.xlu0 %v4082_v14, %s3589_s23 }
 0x336   : > { %1239 = vrot.lane.b32.xlu0 %v4076_v59, %s3590_s27 }
 0x38c   : > { %v1872_v61 = vpop.xlane.xlu0 %1871 }
 0x38d   : > { %v1892_v2 = vsub.f32 %v1602_v29, %v1872_v61 }
 0x38f   : > { %v1901_v15 = vmul.f32 1.442695, %v1892_v2 }
 0x390   : > { %v1869_v16 = vpop.xlane.xlu0 %1868 }
 0x391   : > { %3351 = vpow2.f32 %v1901_v15  ;;  %v1891_v17 = vsub.f32 %v1597_v31, %v1869_v16 }
 0x393   : > { %v1899_v60 = vmul.f32 1.442695, %v1891_v17 }
 0x394   : > { %v1878_v39 = vpop.xlane.xlu0 %1877 }
 0x395   : > { %3353 = vpow2.f32 %v1899_v60  ;;  %v1875_v40 = vpop.xlane.xlu1 %1874  ;;  %v1894_v25 = vsub.f32 %v1689_v35, %v1878_v39 }
 0x396   : > { %v1893_v41 = vsub.f32 %v1684_v38, %v1875_v40 }
 0x397   : > { %v1905_v62 = vmul.f32 1.442695, %v1894_v25 }
 0x398   : > { %v1903_v63 = vmul.f32 1.442695, %v1893_v41 }
 0x399   : > { %3355 = vpow2.f32 %v1905_v62 }
 0x39a   : > { %3357 = vpow2.f32 %v1903_v63 }
 0x39b   : > { %v4092_v27 = vpop.eup %3351 }
 0x39c   : > { %v1918_v0 = vsel %vm1866_vm2, %v4092_v27, 0.0 }
 0x39d   : > { %v1881_v1 = vpop.xlane.xlu1 %1880  ;;  %1919 = vadd.xlane.f32.xlu1 %v1918_v0 }
 0x39e   : > { %v1895_v3 = vsub.f32 %v1771_v47, %v1881_v1 }
 0x39f   : > { %v4096_v4 = vpop.eup %3353 }
 0x3a0   : > { %v1907_v5 = vmul.f32 1.442695, %v1895_v3  ;;  %v1915_v6 = vsel %vm1866_vm2, %v4096_v4, 0.0 }
 0x3a1   : > { %v1884_v7 = vpop.xlane.xlu1 %1883  ;;  %1916 = vadd.xlane.f32.xlu1 %v1915_v6 }
 0x3a2   : > { %3359 = vpow2.f32 %v1907_v5  ;;  %v1896_v8 = vsub.f32 %v1776_v48, %v1884_v7 }
 0x3a3   : > { %v4100_v9 = vpop.eup %3355 }
 0x3a4   : > { %v1909_v10 = vmul.f32 1.442695, %v1896_v8  ;;  %v1924_v11 = vsel %vm1866_vm2, %v4100_v9, 0.0  ;;  %v4104_v12 = vpop.eup %3357 }
 0x3a5   : > { %v1228_v13 = vpop.permute.xlu1 %1227  ;;  %v1887_v18 = vpop.xlane.xlu0 %1886  ;;  %1925 = vadd.xlane.f32.xlu0 %v1924_v11  ;;  %v1921_v21 = vsel %vm1866_vm2, %v4104_v12, 0.0 }
 0x3a6   : > { %3361 = vpow2.f32 %v1909_v10  ;;  %v1897_v19 = vsub.f32 %v1858_v53, %v1887_v18 }
 0x3a8   : > { %v1911_v20 = vmul.f32 1.442695, %v1897_v19 }
 0x3a9   : > { %v1234_v22 = vpop.permute.xlu1 %1233  ;;  %v1890_v23 = vpop.xlane.xlu0 %1889  ;;  %1922 = vadd.xlane.f32.xlu0 %v1921_v21 }
 0x3aa   : > { %3363 = vpow2.f32 %v1911_v20  ;;  %v1898_v24 = vsub.f32 %v1863_v54, %v1890_v23  ;;  %v1245_v35 = vcombine.low %v4076_v59, %v1234_v22  ;;  %v1246_v37 = vcombine.high %v4076_v59, %v1234_v22 }
 0x3ac   : > { %v4108_v26 = vpop.eup %3359  ;;  %v1913_v28 = vmul.f32 1.442695, %v1898_v24  ;;  %v1253_v56 = vrot.slane %v1245_v35, %v3912_v36  ;;  %v1260_v57 = vrot.slane %v1246_v37, %v3912_v36 }
 0x3ad   : > { %v1236_v29 = vpop.permute.xlu1 %1235  ;;  %v1230_v30 = vpop.permute.xlu0 %1229  ;;  %v1927_v31 = vsel %vm1866_vm2, %v4108_v26, 0.0 }
 0x3ae   : > { %1928 = vadd.xlane.f32.xlu0 %v1927_v31  ;;  %v1313_v32 = vcombine.low %v4082_v14, %v1236_v29  ;;  %v1314_v33 = vcombine.high %v4082_v14, %v1236_v29  ;;  %3365 = vpow2.f32 %v1913_v28 }
 0x3b0   : > { %v4114_v34 = vpop.eup %3361  ;;  %v1321_v49 = vrot.slane %v1313_v32, %v3912_v36  ;;  %v1328_v50 = vrot.slane %v1314_v33, %v3912_v36 }
 0x3b1   : > { %v1242_v38 = vpop.permute.xlu1 %1241  ;;  %v1240_v42 = vpop.permute.xlu0 %1239  ;;  %v1930_v44 = vsel %vm1866_vm2, %v4114_v34, 0.0 }
 0x3b2   : > { %v1329_v45 = vcombine.low %v1230_v30, %v1242_v38  ;;  %v1330_v46 = vcombine.high %v1230_v30, %v1242_v38  ;;  %v1261_v47 = vcombine.low %v1228_v13, %v1240_v42  ;;  %v1262_v48 = vcombine.high %v1228_v13, %v1240_v42  ;;  %1931 = vadd.xlane.f32.xlu0 %v1930_v44 }
 0x3b4   : > { %v4122_v51 = vpop.eup %3363  ;;  %v1337_v52 = vrot.slane %v1329_v45, %v3912_v36  ;;  %v1344_v53 = vrot.slane %v1330_v46, %v3912_v36  ;;  %v1269_v54 = vrot.slane %v1261_v47, %v3912_v36  ;;  %v1276_v55 = vrot.slane %v1262_v48, %v3912_v36 }
 0x3b5   : > { %v1933_v58 = vsel %vm1866_vm2, %v4122_v51, 0.0 }
 0x3b6   : > { %v1345_v59 = vcombine.low %v1321_v49, %v1337_v52  ;;  %v1346_v14 = vcombine.high %v1321_v49, %v1337_v52  ;;  %v1361_v61 = vcombine.low %v1328_v50, %v1344_v53  ;;  %v1362_v2 = vcombine.high %v1328_v50, %v1344_v53  ;;  %1934 = vadd.xlane.f32.xlu1 %v1933_v58 }
 0x3b7   : > { %v1277_v15 = vcombine.low %v1253_v56, %v1269_v54  ;;  %v1278_v16 = vcombine.high %v1253_v56, %v1269_v54  ;;  %v1293_v17 = vcombine.low %v1260_v57, %v1276_v55  ;;  %v1294_v60 = vcombine.high %v1260_v57, %v1276_v55 }
 0x3b8   : > { %v1353_v39 = vrot.slane %v1345_v59, %v3915_v43  ;;  %v1360_v40 = vrot.slane %v1346_v14, %v3915_v43  ;;  %v1369_v25 = vrot.slane %v1361_v61, %v3915_v43  ;;  %v1376_v41 = vrot.slane %v1362_v2, %v3915_v43  ;;  %v4140_v8 = vpop.eup %3365 }
 0x3b9   : > { %v1285_v62 = vrot.slane %v1277_v15, %v3915_v43  ;;  %v1292_v63 = vrot.slane %v1278_v16, %v3915_v43  ;;  %v1301_v0 = vrot.slane %v1293_v17, %v3915_v43  ;;  %v1308_v1 = vrot.slane %v1294_v60, %v3915_v43 }
 0x3ba   : > { %v1449_v3 = vcombine.low %v1353_v39, %v1360_v40  ;;  %v2877_v5 = vcombine.high %v1353_v39, %v1360_v40  ;;  %v1465_v6 = vcombine.low %v1369_v25, %v1376_v41  ;;  %v2878_v7 = vcombine.high %v1369_v25, %v1376_v41 }
 0x3bb   : > { %v1381_v10 = vcombine.low %v1285_v62, %v1292_v63  ;;  %v2875_v11 = vcombine.high %v1285_v62, %v1292_v63  ;;  %v1397_v13 = vcombine.low %v1301_v0, %v1308_v1  ;;  %v2876_v18 = vcombine.high %v1301_v0, %v1308_v1 }
 0x3bc   : > { %v1456_v19 = vrot.slane %v1449_v3, %v3912_v36  ;;  %v1464_v20 = vrot.slane %v2877_v5, %v3912_v36  ;;  %v1472_v21 = vrot.slane %v1465_v6, %v3912_v36  ;;  %v1480_v22 = vrot.slane %v2878_v7, %v3912_v36 }
 0x3bd   : > { %v1388_v23 = vrot.slane %v1381_v10, %v3912_v36  ;;  %v1396_v24 = vrot.slane %v2875_v11, %v3912_v36  ;;  %v1404_v28 = vrot.slane %v1397_v13, %v3912_v36  ;;  %v1412_v29 = vrot.slane %v2876_v18, %v3912_v36 }
 0x3be   : > { %v1936_v30 = vsel %vm1866_vm2, %v4140_v8, 0.0  ;;  %v1481_v31 = vcombine.low %v1456_v19, %v1464_v20  ;;  %v1497_v32 = vcombine.low %v1472_v21, %v1480_v22  ;;  %v1482_v33 = vcombine.high %v1456_v19, %v1464_v20 }
 0x3bf   : > { %1937 = vadd.xlane.f32.xlu0 %v1936_v30  ;;  %v1413_v35 = vcombine.low %v1388_v23, %v1396_v24  ;;  %v1429_v37 = vcombine.low %v1404_v28, %v1412_v29  ;;  %v1414_v38 = vcombine.high %v1388_v23, %v1396_v24  ;;  %v1430_v42 = vcombine.high %v1404_v28, %v1412_v29  ;;  %v2585_v23 = vld [vmem:[#allocation8 + $0x10] sm:$0xff]  ;;  %v2586_v28 = vld [vmem:[#allocation8 + $0x18] sm:$0xff]  ;;  %v2587_v29 = vld [vmem:[#allocation8 + $0x20] sm:$0xff] }
 0x3c0   : > { %v1489_v44 = vrot.slane %v1481_v31, %v3915_v43  ;;  %v1505_v45 = vrot.slane %v1497_v32, %v3915_v43  ;;  %v1496_v46 = vrot.slane %v1482_v33, %v3915_v43  ;;  %v1498_v47 = vcombine.high %v1472_v21, %v1480_v22  ;;  %v2584_v22 = vld [vmem:[#allocation8 + $0x8] sm:$0xff]  ;;  %v2590_v32 = vld [vmem:[#allocation8 + $0x38] sm:$0xff] }
 0x3c1   : > { %v1421_v48 = vrot.slane %v1413_v35, %v3915_v43  ;;  %v1437_v49 = vrot.slane %v1429_v37, %v3915_v43  ;;  %v1428_v50 = vrot.slane %v1414_v38, %v3915_v43  ;;  %v1444_v52 = vrot.slane %v1430_v42, %v3915_v43  ;;  %v2588_v30 = vld [vmem:[#allocation8 + $0x28] sm:$0xff]  ;;  %v2593_v38 = vld [vmem:[#allocation8 + $0x50] sm:$0xff]  ;;  %v2594_v42 = vld [vmem:[#allocation8 + $0x58] sm:$0xff] }
 0x3c2   : > { %v1513_v53 = vcombine.low %v1489_v44, %v1505_v45  ;;  %v1514_v54 = vcombine.high %v1489_v44, %v1505_v45  ;;  %v1512_v55 = vrot.slane %v1498_v47, %v3915_v43  ;;  %v3223_v31 = vpack.c.bf16 %v2588_v30, %v2587_v29  ;;  %v2592_v35 = vld [vmem:[#allocation8 + $0x48] sm:$0xff] }
 0x3c3   : > { %v1445_v56 = vcombine.low %v1421_v48, %v1437_v49  ;;  %v1446_v57 = vcombine.high %v1421_v48, %v1437_v49  ;;  %v1447_v58 = vcombine.low %v1428_v50, %v1444_v52  ;;  %v1448_v59 = vcombine.high %v1428_v50, %v1444_v52 }
 0x3c4   : > { %v1515_v14 = vcombine.low %v1496_v46, %v1512_v55  ;;  %v1516_v61 = vcombine.high %v1496_v46, %v1512_v55  ;;  %v3235_v44 = vpack.c.bf16 %v2594_v42, %v2593_v38 }
 0x3c5   : > { %v3199_v2 = vpack.c.bf16 %v1513_v53, %v1445_v56  ;;  %v3203_v15 = vpack.c.bf16 %v1514_v54, %v1446_v57 }
 0x3c6   : > { %v3207_v16 = vpack.c.bf16 %v1515_v14, %v1447_v58  ;;  %v3211_v17 = vpack.c.bf16 %v1516_v61, %v1448_v59 }
 0x3c7   : > { %3200 = vmatprep.subr.bf16.mxu0 %v3199_v2  ;;  %3204 = vmatprep.subr.bf16.mxu1 %v3203_v15 }
 0x3c8   : > { %3202 = vmatpush3.bf16.msra.mxu0 %v3199_v2  ;;  %3206 = vmatpush3.bf16.msra.mxu1 %v3203_v15 }
 0x3c9   : > { %3208 = vmatprep.subr.bf16.mxu0 %v3207_v16  ;;  %3212 = vmatprep.subr.bf16.mxu1 %v3211_v17 }
 0x42a   : > { %v1920_v60 = vpop.xlane.xlu1 %1919 }
 0x42b   : > { %3367 = vrcp.f32 %v1920_v60 }
 0x42e   : > { %v1917_v39 = vpop.xlane.xlu1 %1916 }
 0x42f   : > { %3369 = vrcp.f32 %v1917_v39 }
 0x432   : > { %v1926_v40 = vpop.xlane.xlu0 %1925 }
 0x433   : > { %3371 = vrcp.f32 %v1926_v40 }
 0x435   : > { %v3368_v41 = vpop.eup %3367 }
 0x436   : > { %v1923_v25 = vpop.xlane.xlu0 %1922  ;;  %v1948_v0 = vmul.f32 %v3368_v41, %v4092_v27 }
 0x437   : > { %3373 = vrcp.f32 %v1923_v25 }
 0x439   : > { %v3370_v62 = vpop.eup %3369 }
 0x43a   : > { %v1947_v63 = vmul.f32 %v3370_v62, %v4096_v4 }
 0x43b   : > { %v1929_v1 = vpop.xlane.xlu0 %1928 }
 0x43c   : > { %3375 = vrcp.f32 %v1929_v1  ;;  %3052 = vmatprep.mubr.msk.f32.mxu0 %vm1866_vm2, %v1947_v63 }
 0x43d   : > { %3053 = vmatmul.mubr.msk.f32.vlgmr.msra.gmra.mrb[4].mxu0 %vm1866_vm2, %v1948_v0  ;;  %v3372_v5 = vpop.eup %3371 }
 0x43e   : > { %3210 = vmatpush3.bf16.msra.mxu0 %v3207_v16  ;;  %v1950_v10 = vmul.f32 %v3372_v5, %v4100_v9 }
 0x43f   : > { %v1932_v3 = vpop.xlane.xlu0 %1931 }
 0x440   : > { %3377 = vrcp.f32 %v1932_v3 }
 0x441   : > { %v3374_v6 = vpop.eup %3373 }
 0x442   : > { %v1949_v7 = vmul.f32 %v3374_v6, %v4104_v12 }
 0x443   : > { %v1935_v11 = vpop.xlane.xlu1 %1934 }
 0x444   : > { %3379 = vrcp.f32 %v1935_v11  ;;  %3059 = vmatprep.mubr.msk.f32.mxu1 %vm1866_vm2, %v1949_v7 }
 0x445   : > { %3060 = vmatmul.mubr.msk.f32.vlgmr.msra.gmra.mrb[10].mxu1 %vm1866_vm2, %v1950_v10 }
 0x446   : > { %v3376_v27 = vpop.eup %3375  ;;  %3214 = vmatpush3.bf16.msra.mxu1 %v3211_v17 }
 0x447   : > { %v1951_v4 = vmul.f32 %v3376_v27, %v4108_v26  ;;  %v2583_v26 = vld [vmem:[#allocation8] sm:$0xff] }
 0x448   : > { %v3215_v24 = vpack.c.bf16 %v2584_v22, %v2583_v26 }
 0x449   : > { %3066 = vmatprep.mubr.msk.f32.mxu0 %vm1866_vm2, %v1951_v4 }
 0x44a   : > { %v3378_v13 = vpop.eup %3377  ;;  %3216 = vmatprep.subr.bf16.mxu0 %v3215_v24 }
 0x44b   : > { %v1952_v18 = vmul.f32 %v3378_v13, %v4114_v34  ;;  %v3219_v34 = vpack.c.bf16 %v2586_v28, %v2585_v23 }
 0x44c   : > { %v1938_v19 = vpop.xlane.xlu0 %1937 }
 0x44d   : > { %3381 = vrcp.f32 %v1938_v19  ;;  %3067 = vmatmul.mubr.msk.f32.vlgmr.msra.gmra.mrb[6].mxu0 %vm1866_vm2, %v1952_v18 }
 0x44e   : > { %v3380_v9 = vpop.eup %3379  ;;  %3218 = vmatpush3.bf16.msra.mxu0 %v3215_v24 }
 0x44f   : > { %v1953_v12 = vmul.f32 %v3380_v9, %v4122_v51  ;;  %3220 = vmatprep.subr.bf16.mxu0 %v3219_v34  ;;  %v2589_v51 = vld [vmem:[#allocation8 + $0x30] sm:$0xff] }
 0x450   : > { %v3227_v33 = vpack.c.bf16 %v2590_v32, %v2589_v51 }
 0x451   : > { %3073 = vmatprep.mubr.msk.f32.mxu1 %vm1866_vm2, %v1953_v12 }
 0x452   : > { %3222 = vmatpush3.bf16.msra.mxu0 %v3219_v34 }
 0x453   : > { %3224 = vmatprep.subr.bf16.mxu0 %v3223_v31 }
 0x456   : > { %3226 = vmatpush3.bf16.msra.mxu0 %v3223_v31 }
 0x457   : > { %v3382_v20 = vpop.eup %3381  ;;  %3228 = vmatprep.subr.bf16.mxu0 %v3227_v33 }
 0x458   : > { %v1954_v21 = vmul.f32 %v3382_v20, %v4140_v8  ;;  %v2591_v8 = vld [vmem:[#allocation8 + $0x40] sm:$0xff] }
 0x459   : > { %v3231_v37 = vpack.c.bf16 %v2592_v35, %v2591_v8 }
 0x45a   : > { %3074 = vmatmul.mubr.msk.f32.vlgmr.msra.gmra.mrb[12].mxu1 %vm1866_vm2, %v1954_v21  ;;  %3230 = vmatpush3.bf16.msra.mxu0 %v3227_v33 }
 0x45b   : > { %3232 = vmatprep.subr.bf16.mxu0 %v3231_v37 }
 0x45e   : > { %3234 = vmatpush3.bf16.msra.mxu0 %v3231_v37 }
 0x45f   : > { %3236 = vmatprep.subr.bf16.mxu0 %v3235_v44 }
 0x462   : > { %3238 = vmatpush3.bf16.msra.mxu0 %v3235_v44 }
 0x510   : > { %v3054_v45 = vpop.f32.mrb[4].mxu0 }
 0x511   : > { %v2027_v46 = vpop.f32.mrb[5].mxu0 }
 0x518   : > { %v3061_v47 = vpop.f32.mrb[10].mxu1 }
 0x519   : > { %v2108_v48 = vpop.f32.mrb[11].mxu1 }
 0x520   : > { %v3068_v49 = vpop.f32.mrb[6].mxu0 }
 0x521   : > { %v2347_v50 = vcombine.low %v3054_v45, %v3068_v49  ;;  %v2348_v52 = vcombine.high %v3054_v45, %v3068_v49  ;;  %v2189_v53 = vpop.f32.mrb[7].mxu0 }
 0x522   : > { %v2279_v54 = vcombine.low %v2027_v46, %v2189_v53  ;;  %v2280_v55 = vcombine.high %v2027_v46, %v2189_v53 }
 0x523   : > { %v2355_v2 = vrot.slane %v2347_v50, %v3912_v36  ;;  %v2362_v15 = vrot.slane %v2348_v52, %v3912_v36 }
 0x524   : > { %v2287_v60 = vrot.slane %v2279_v54, %v3912_v36  ;;  %v2294_v39 = vrot.slane %v2280_v55, %v3912_v36  ;;  %v2595_v55 = vld [vmem:[#allocation8 + $0x60] sm:$0xff] }
 0x52d   : > { %v3075_v56 = vpop.f32.mrb[12].mxu1 }
 0x52e   : > { %v2363_v57 = vcombine.low %v3061_v47, %v3075_v56  ;;  %v2364_v58 = vcombine.high %v3061_v47, %v3075_v56  ;;  %v2270_v59 = vpop.f32.mrb[13].mxu1  ;;  %v2596_v56 = vld [vmem:[#allocation8 + $0x68] sm:$0xff] }
 0x52f   : > { %v2295_v14 = vcombine.low %v2108_v48, %v2270_v59  ;;  %v2296_v61 = vcombine.high %v2108_v48, %v2270_v59 }
 0x530   : > { %v2371_v16 = vrot.slane %v2363_v57, %v3912_v36  ;;  %v2378_v17 = vrot.slane %v2364_v58, %v3912_v36 }
 0x531   : > { %v2303_v40 = vrot.slane %v2295_v14, %v3912_v36  ;;  %v2310_v25 = vrot.slane %v2296_v61, %v3912_v36  ;;  %v2597_v61 = vld [vmem:[#allocation8 + $0x70] sm:$0xff] }
 0x532   : > { %v2379_v41 = vcombine.low %v2355_v2, %v2371_v16  ;;  %v2380_v62 = vcombine.high %v2355_v2, %v2371_v16  ;;  %v2395_v63 = vcombine.low %v2362_v15, %v2378_v17  ;;  %v2396_v0 = vcombine.high %v2362_v15, %v2378_v17  ;;  %v2598_v2 = vld [vmem:[#allocation8 + $0x78] sm:$0xff] }
 0x533   : > { %v2311_v1 = vcombine.low %v2287_v60, %v2303_v40  ;;  %v2312_v3 = vcombine.high %v2287_v60, %v2303_v40  ;;  %v2327_v5 = vcombine.low %v2294_v39, %v2310_v25  ;;  %v2328_v6 = vcombine.high %v2294_v39, %v2310_v25 }
 0x534   : > { %v2387_v7 = vrot.slane %v2379_v41, %v3915_v43  ;;  %v2394_v10 = vrot.slane %v2380_v62, %v3915_v43  ;;  %v2403_v11 = vrot.slane %v2395_v63, %v3915_v43  ;;  %v2410_v27 = vrot.slane %v2396_v0, %v3915_v43 }
 0x535   : > { %v2319_v4 = vrot.slane %v2311_v1, %v3915_v43  ;;  %v2326_v13 = vrot.slane %v2312_v3, %v3915_v43  ;;  %v2335_v18 = vrot.slane %v2327_v5, %v3915_v43  ;;  %v2342_v19 = vrot.slane %v2328_v6, %v3915_v43 }
 0x536   : > { %v2483_v9 = vcombine.low %v2387_v7, %v2394_v10  ;;  %v2905_v12 = vcombine.high %v2387_v7, %v2394_v10  ;;  %v2499_v20 = vcombine.low %v2403_v11, %v2410_v27  ;;  %v2906_v21 = vcombine.high %v2403_v11, %v2410_v27 }
 0x537   : > { %v2415_v26 = vcombine.low %v2319_v4, %v2326_v13  ;;  %v2903_v22 = vcombine.high %v2319_v4, %v2326_v13  ;;  %v2431_v23 = vcombine.low %v2335_v18, %v2342_v19  ;;  %v2904_v24 = vcombine.high %v2335_v18, %v2342_v19 }
 0x538   : > { %v2490_v28 = vrot.slane %v2483_v9, %v3912_v36  ;;  %v2498_v34 = vrot.slane %v2905_v12, %v3912_v36  ;;  %v2506_v29 = vrot.slane %v2499_v20, %v3912_v36  ;;  %v2514_v30 = vrot.slane %v2906_v21, %v3912_v36  ;;  %v2907_v9 = vld [vmem:[%s4282_s6] ss:$0 sm:$0xff] }
 0x539   : > { %v2422_v31 = vrot.slane %v2415_v26, %v3912_v36  ;;  %v2430_v51 = vrot.slane %v2903_v22, %v3912_v36  ;;  %v2438_v32 = vrot.slane %v2431_v23, %v3912_v36  ;;  %v2446_v33 = vrot.slane %v2904_v24, %v3912_v36  ;;  %v3387_v22 = vld [vmem:[%s3851_s1 + $0x8] sm:$0xff]  ;;  %v3388_v24 = vld [vmem:[%s3851_s1] sm:$0xff] }
 0x53a   : > { %v2516_v8 = vcombine.high %v2490_v28, %v2498_v34  ;;  %v2532_v35 = vcombine.high %v2506_v29, %v2514_v30  ;;  %v2515_v37 = vcombine.low %v2490_v28, %v2498_v34  ;;  %v2531_v38 = vcombine.low %v2506_v29, %v2514_v30 }
 0x53b   : > { %v2448_v42 = vcombine.high %v2422_v31, %v2430_v51  ;;  %v2464_v44 = vcombine.high %v2438_v32, %v2446_v33  ;;  %v2447_v45 = vcombine.low %v2422_v31, %v2430_v51  ;;  %v2463_v46 = vcombine.low %v2438_v32, %v2446_v33 }
 0x53c   : > { %v2530_v47 = vrot.slane %v2516_v8, %v3915_v43  ;;  %v2546_v48 = vrot.slane %v2532_v35, %v3915_v43  ;;  %v2523_v49 = vrot.slane %v2515_v37, %v3915_v43  ;;  %v2539_v50 = vrot.slane %v2531_v38, %v3915_v43 }
 0x53d   : > { %v2462_v52 = vrot.slane %v2448_v42, %v3915_v43  ;;  %v2478_v36 = vrot.slane %v2464_v44, %v3915_v43  ;;  %v2455_v53 = vrot.slane %v2447_v45, %v3915_v43  ;;  %v2471_v54 = vrot.slane %v2463_v46, %v3915_v43 }
 0x53e   : > { %v2549_v57 = vcombine.low %v2530_v47, %v2546_v48  ;;  %v2547_v58 = vcombine.low %v2523_v49, %v2539_v50  ;;  %v2548_v59 = vcombine.high %v2523_v49, %v2539_v50  ;;  %v2550_v14 = vcombine.high %v2530_v47, %v2546_v48  ;;  %v2908_v47 = vld [vmem:[%s4283_s7] ss:$0 sm:$0xff] }
 0x53f   : > { %v2481_v15 = vcombine.low %v2462_v52, %v2478_v36  ;;  %v2480_v16 = vcombine.high %v2455_v53, %v2471_v54  ;;  %v2479_v17 = vcombine.low %v2455_v53, %v2471_v54  ;;  %v2482_v60 = vcombine.high %v2462_v52, %v2478_v36  ;;  %v2909_v50 = vld [vmem:[%s4284_s8] ss:$0 sm:$0xff] }
 0x540   : > { %v3239_v39 = vpack.c.bf16 %v2596_v56, %v2595_v55  ;;  %v3243_v62 = vpack.c.bf16 %v2598_v2, %v2597_v61 }
 0x541   : > { %v3341_v40 = vpack.i.bf16 %v2549_v57, %v2481_v15  ;;  %v3336_v25 = vpack.i.bf16 %v2548_v59, %v2480_v16  ;;  %v3346_v41 = vpack.i.bf16 %v2550_v14, %v2482_v60 }
 0x542   : > { %3240 = vmatprep.subr.bf16.mxu0 %v3239_v39 }
 0x543   : > { %3342 = vrot.lane.b32.xlu0 %v3341_v40, %s3588_s21  ;;  %3337 = vrot.lane.b32.xlu1 %v3336_v25, %s3590_s27  ;;  %s405_s21 = scalar_lea.vmem [#allocation10], %s2861_s26  ;;  %s3593_s26 = smov [#allocation10]  }
 0x544   : > { %3242 = vmatpush3.bf16.msra.mxu0 %v3239_v39  ;;  %s3507_s19 = sshll.u32 %s3593_s26, 4  ;;  %s3508_s19 = int_to_ptr.vmem [resolvable:$false] %s3507_s19 }
 0x545   : > { %3244 = vmatprep.subr.bf16.mxu0 %v3243_v62  ;;  %s3509_s20 = scalar_lea.vmem %s3508_s19, 512 }
 0x547   : > { %3347 = vrot.lane.b32.xlu1 %v3346_v41, %s3589_s23  ;;  %s2740_s23 = sshll.u32 %s405_s21, 4  ;;  %s4232_s23 = int_to_ptr.vmem [resolvable:$true] %s2740_s23 }
 0x548   : > { %3246 = vmatpush3.bf16.msra.mxu0 %v3243_v62  ;;  %s3503_s16 = scalar_lea.vmem %s4232_s23, 256  ;;  %p3510_p1 = scmp.lt.s32.totalorder %s4232_s23, %s3508_s19 }
 0x549   : > { %p3504_p3 = scmp.ne.s32.totalorder %s4232_s23, %s3503_s16  ;;  %p3511_p2 = scmp.lt.s32.totalorder %s3509_s20, %s3503_s16 }
 0x54b   : > { %p3505_p7 = pnand %p3504_p3, %p3794_p5  ;;  %p3512_p4 = por %p3511_p2, %p3510_p1 }
 0x54d   : > { %p3506_p12 = pneg %p3505_p7 }
 0x54f   : > { %p3513_p9 = pnand %p3512_p4, %p3506_p12 }
 0x5b5   : > { %v3343_v43 = vpop.permute.xlu0 %3342  ;;  %v3338_v63 = vpop.permute.xlu1 %3337 }
 0x5b6   : > { %v3340_v0 = vunpack.i.h.bf16 %v3338_v63  ;;  %v3339_v1 = vunpack.i.l.bf16 %v3338_v63  ;;  %v3345_v3 = vunpack.i.h.bf16 %v3343_v43  ;;  %v3344_v5 = vunpack.i.l.bf16 %v3343_v43 }
 0x5b8   : > { %v2576_v6 = vsel %vm1517_vm0, %v2547_v58, %v3340_v0  ;;  %v2575_v7 = vsel %vm1517_vm0, %v2479_v17, %v3339_v1 }
 0x5b9   : > { %v3348_v10 = vpop.permute.xlu1 %3347  ;;  %v2578_v4 = vsel %vm2577_vm3, %v2575_v7, %v3344_v5  ;;  %v2579_v13 = vsel %vm2577_vm3, %v2576_v6, %v3345_v3 }
 0x5ba   : > { %v3350_v11 = vunpack.i.h.bf16 %v3348_v10  ;;  %v3349_v27 = vunpack.i.l.bf16 %v3348_v10 }
 0x5bc   : > { %v2581_v18 = vsel %vm2580_vm4, %v2578_v4, %v3349_v27  ;;  %v2582_v19 = vsel %vm2580_vm4, %v2579_v13, %v3350_v11 }
 0x5bd   : > { %3108 = vmatprep.mubr.f32.mxu0 %v2581_v18 }
 0x5be   : > { %3109 = vmatmul.mubr.f32.vlgmr.msra.gmra.mrb[8].mxu0 %v2582_v19 }
 0x691   : > { %v3110_v12 = vpop.f32.mrb[8].mxu0 }
 0x692   : > { %v2678_v20 = vadd.f32 %v3110_v12, %v2907_v9  ;;  %v2672_v21 = vpop.f32.mrb[9].mxu0 }
 0x693   : > { %v2673_v26 = vadd.f32 %v2907_v9, %v2672_v21 }
 0x694   : > { %v2682_v23 = vadd.f32 %v3387_v22, %v2678_v20 }
 0x695   : > { %v2681_v28 = vadd.f32 %v3388_v24, %v2673_v26 }
 0x696   : > { %2687 = vadd.xlane.f32.xlu0 %v2682_v23 }
 0x697   : > { %2685 = vadd.xlane.f32.xlu1 %v2681_v28 }
 0x723   : > { %v2688_v34 = vpop.xlane.xlu0 %2687 }
 0x724   : > { %v2691_v29 = vmul.f32 0.0078125, %v2688_v34  ;;  %v2686_v30 = vpop.xlane.xlu1 %2685 }
 0x725   : > { %v2690_v31 = vmul.f32 0.0078125, %v2686_v30 }
 0x726   : > { %v2693_v51 = vsub.f32 %v2682_v23, %v2691_v29 }
 0x727   : > { %v2692_v32 = vsub.f32 %v2681_v28, %v2690_v31 }
 0x728   : > { %v2695_v33 = vmul.f32 %v2693_v51, %v2693_v51 }
 0x729   : > { %v2694_v8 = vmul.f32 %v2692_v32, %v2692_v32 }
 0x72a   : > { %2698 = vadd.xlane.f32.xlu1 %v2695_v33 }
 0x72b   : > { %2696 = vadd.xlane.f32.xlu0 %v2694_v8 }
 0x7b7   : > { %v2699_v35 = vpop.xlane.xlu1 %2698 }
 0x7b8   : > { %v2701_v37 = vmul.f32 0.0078125, %v2699_v35  ;;  %v2697_v38 = vpop.xlane.xlu0 %2696 }
 0x7b9   : > { %v2700_v42 = vmul.f32 0.0078125, %v2697_v38 }
 0x7ba   : > { %v2703_v44 = vadd.f32 1e-05, %v2701_v37 }
 0x7bb   : > { %v2702_v45 = vadd.f32 1e-05, %v2700_v42 }
 0x7bc   : > { %3383 = vrsqrt.f32 %v2703_v44 }
 0x7bd   : > { %3385 = vrsqrt.f32 %v2702_v45 }
 0x7c6   : > { %v3384_v46 = vpop.eup %3383 }
 0x7c7   : > { %v3386_v48 = vpop.eup %3385  ;;  %v2707_v49 = vmul.f32 %v3384_v46, %v2693_v51 }
 0x7c8   : > { %v2706_v52 = vmul.f32 %v3386_v48, %v2692_v32 }
 0x7c9   : > { %v2715_v36 = vmul.f32 %v2908_v47, %v2707_v49 }
 0x7ca   : > { %v2714_v53 = vmul.f32 %v2908_v47, %v2706_v52 }
 0x7cb   : > { %v2723_v54 = vadd.f32 %v2909_v50, %v2715_v36 }
 0x7cc   : > { %v2722_v55 = vadd.f32 %v2909_v50, %v2714_v53 }
 0x7cd   : > { %2725 = vst [vmem:[%s405_s21 + $0x8] sm:$0xff] %v2723_v54 }
 0x7ce   : > { %2724 = vst [vmem:[%s405_s21] sm:$0xff] %v2722_v55 }
 0x7cf   : > { %3516 = shalt.err (!%p3513_p9)
}
 0x7d0   : > { %s3517_s25 = scalar_lea.hbm %s4230_s18, 256  ;;  %s3521_s15 = scalar_lea.hbm %s4319_s9, 512 }
 0x7d1   : > { %p3518_p0 = scmp.ne.s32.totalorder %s4230_s18, %s3517_s25  ;;  %p3522_p13 = scmp.lt.u32.totalorder %s4230_s18, %s4319_s9 }
 0x7d2   : > { %p3523_p6 = scmp.lt.u32.totalorder %s3521_s15, %s3517_s25  ;;  %p3525_p3 = scmp.lt.u32.totalorder %s3517_s25, %s4230_s18 }
 0x7d3   : > { %p3519_p11 = pnand %p3518_p0, %p3794_p5 }
 0x7d4   : > { %p3524_p10 = por %p3523_p6, %p3522_p13 }
 0x7d5   : > { %p3520_p8 = pneg %p3519_p11 }
 0x7d6   : > { %p3526_p7 = por %p3525_p3, %p3524_p10 }
 0x7d8   : > { %p3527_p12 = pnand %p3526_p7, %p3520_p8 }
 0x7da   : > { %3530 = shalt.err (!%p3527_p12)
}
 0x7db   : > { %s3594_s27 = smov 128   ;;  %s3595_s22 = smov 8  }
 0x7dc   : > { %3261 = dma.vmem_to_hbm [thread:$0]  (%p3794_p5), %s4232_s23, 256, %s4230_s18, %s2727_s13, %s3594_s27, %s3594_s27, %s3595_s22  }
 0x7dd PF: > { %s4320_s16 = sld [smem:[#allocation15_spill]]  ;;  %s4321_s26 = sld [smem:[#allocation16_spill]] }
 0x7de   : > { %p4323_p2 = scmp.ge.s32.totalorder %s3577_s12, 2 }
 0x7e3   : > { %s2755_s19 = sand.u32 1, %s4320_s16   ;;  %p4322_p1 = scmp.ne.s32.totalorder %s4321_s26, 0 }
 0x7e4   : > { %s2756_s20 = scalar_lea.sflag [#allocation4], %s2755_s19 }
 0x7e5   : > { %p3278_p4 = pnand %p4323_p2, %p4322_p1 }
 0x7e7   : > { %3560 = dma.done.wait (!%p3278_p4), %s2756_s20, 256  }
 0x7e8   : > { %3562 = vsyncadd (!%p3278_p4), %s2756_s20, 4294967040  ;;  %p24_p9 = scmp.ge.s32.totalorder %s3759_s29, 4   ;;  %s4324_s30 = smov %s3569_s10 }
 0x7e9   : > { %s4325_s10 = smov %s3573_s11  ;;  %s4326_s11 = smov %s3790_s24 }
 0x7ea   : > { %s4327_s12 = smov %s3759_s29  ;;  %26 = sbr.rel (!%p24_p9) target bundleno = 10 (0xa), region = 116 }
 0x7f1   :  { %2761 = vsyncpa [#allocation3], 1 }
 0x7f2   :  { %2763 = vsyncpa [#allocation3 + $0x1], 1 }
 0x7f3   :  { %2764 = vsyncpa [#allocation6], 1 }
 0x7f4   :  { %2765 = vsyncpa [#allocation9], 1 }
 0x7f5   :  { %2766 = vsyncpa [#allocation4], 1 }
 0x7f6   :  { %2768 = vsyncpa [#allocation4 + $0x1], 1 }

</bundles_post_ra>
